<compile_context>
chip_gen: v5e
topology: v5e:2x2
jax: 0.10.0
libtpu: 0.0.40
codegen_flags: <defaults>
</compile_context>

<pallas_src>
import functools

import jax
import jax.numpy as jnp
from jax import lax
from jax.experimental import pallas as pl
from jax.experimental.pallas import tpu as pltpu


_DILATIONS = (1, 2, 5, 8)


def _fused_dilated_convnet_kernel(x_ref, w_ref, b_ref, out_ref, stack_ref,
                                  *, H, W, C, dils, compute_dtype):
    """All 4 dilated 3x3 convs + residual for ONE image, activations resident.

    Layout: channels on sublanes, flattened spatial (H*W) on lanes.
      x_ref     : (C, H*W)             input image (lane-dense)
      w_ref     : (L, C, 9*C)          per-layer weights, columns [(kh,kw), ci]
      b_ref     : (L, C, 1)            per-layer bias
      out_ref   : (C, H*W)             x + conv4(conv3(conv2(conv1(x))))
      stack_ref : (9*C, H*W) scratch   im2col tile, rebuilt per layer
    """
    HW = H * W
    x0 = x_ref[...].astype(jnp.float32)                        # (C, HW)

    # Static per-lane spatial coordinates (2-D iota; 1-D iota is not legal on
    # TPU).  Row (y) bounds are expressed directly on the flat index p; column
    # (x) bounds need p mod W (a bitmask when W is a power of two).
    pos = lax.broadcasted_iota(jnp.int32, (C, HW), 1)           # p = y*W + x
    if (W & (W - 1)) == 0:
        xx = jnp.bitwise_and(pos, W - 1)
    else:
        xx = pos % W

    h = x0
    for layer, dil in enumerate(dils):
        # Build the im2col tile: 9 shifted + masked copies of h, stacked along
        # the sublane axis.  A tap at spatial offset (dh, dw) is a lane roll of
        # the flattened image by dh*W + dw; positions whose source falls
        # outside the image ("same" zero padding) are masked to 0.  The mask is
        # a function of the *destination* coordinate only, so any roll
        # wrap-around is automatically zeroed as well.
        t = 0
        for kh in range(3):
            for kw in range(3):
                dh = (kh - 1) * dil
                dw = (kw - 1) * dil
                off = dh * W + dw
                tap = h if off == 0 else pltpu.roll(h, shift=(-off) % HW, axis=1)
                conds = []
                if dh > 0:                       # need source row y+dh < H
                    conds.append(pos < (H - dh) * W)
                elif dh < 0:                     # need source row y+dh >= 0
                    conds.append(pos >= (-dh) * W)
                if dw > 0:                       # need source col x+dw < W
                    conds.append(xx < (W - dw))
                elif dw < 0:                     # need source col x+dw >= 0
                    conds.append(xx >= (-dw))
                if conds:
                    mask = functools.reduce(jnp.logical_and, conds)
                    tap = jnp.where(mask, tap, 0.0)
                stack_ref[pl.ds(t * C, C), :] = tap.astype(stack_ref.dtype)
                t += 1

        # One (C, 9C) x (9C, HW) contraction on the MXU, f32 accumulation.
        h = jnp.dot(
            w_ref[layer],
            stack_ref[...],
            preferred_element_type=jnp.float32,
        )
        h = h + b_ref[layer]                                    # (C,1) bcast

    out_ref[...] = (x0 + h).astype(out_ref.dtype)               # fused residual


def four_layer_dilated_conv_net_a(x_nchw, params, *, compute_dtype=jnp.float32):
    """Forward pass matching the PyTorch module.  Input/output are NCHW."""
    N, C, H, W = x_nchw.shape
    HW = H * W
    L = len(_DILATIONS)
    assert len(params) == L

    # Pack weights as (L, C_out, 9*C_in) with columns ordered [(kh,kw), ci] to
    # match the kernel's im2col row order; biases as (L, C, 1).
    # params[i] weights are HWIO (kh, kw, Cin, Cout).
    w_all = jnp.stack(
        [jnp.transpose(w, (3, 0, 1, 2)).reshape(C, 9 * C) for (w, _) in params],
        axis=0,
    ).astype(compute_dtype)
    b_all = jnp.stack(
        [b.reshape(C, 1) for (_, b) in params], axis=0
    ).astype(jnp.float32)

    # NCHW -> (N, C, H*W): free reshape (no transpose, no copy); spatial becomes
    # the lane dimension so every output store is lane-dense.
    x_flat = x_nchw.reshape(N, C, HW)

    kernel = functools.partial(
        _fused_dilated_convnet_kernel,
        H=H, W=W, C=C, dils=_DILATIONS, compute_dtype=compute_dtype,
    )

    out_flat = pl.pallas_call(
        kernel,
        out_shape=jax.ShapeDtypeStruct((N, C, HW), x_nchw.dtype),
        grid_spec=pltpu.PrefetchScalarGridSpec(
            num_scalar_prefetch=0,
            grid=(N,),  # one image per step; "parallel" keeps both v7x TCs busy
            in_specs=[
                pl.BlockSpec((None, C, HW), lambda n: (n, 0, 0)),
                pl.BlockSpec((L, C, 9 * C), lambda n: (0, 0, 0)),
                pl.BlockSpec((L, C, 1), lambda n: (0, 0, 0)),
            ],
            out_specs=pl.BlockSpec((None, C, HW), lambda n: (n, 0, 0)),
            scratch_shapes=[pltpu.VMEM((9 * C, HW), compute_dtype)],
        ),
        compiler_params=pltpu.CompilerParams(
            dimension_semantics=("parallel",),
        ),
    )(x_flat, w_all, b_all)

    return out_flat.reshape(N, C, H, W)


def init_params(key, channels):
    """Deterministic parameter init (kaiming-uniform-like), weights in HWIO."""
    params = []
    fan_in = channels * 3 * 3
    bound = 1.0 / float(jnp.sqrt(fan_in))
    for i in range(4):
        kw_key, kb_key = jax.random.split(jax.random.fold_in(key, i))
        w = jax.random.uniform(
            kw_key, (3, 3, channels, channels), jnp.float32, -bound, bound
        )
        b = jax.random.uniform(kb_key, (channels,), jnp.float32, -bound, bound)
        params.append((w, b))
    return params


def _reference_forward(x_nchw, params):
    """Pure-JAX reference (lax.conv_general_dilated) for correctness check."""
    h = x_nchw
    for (w, b), dil in zip(params, _DILATIONS):
        h = jax.lax.conv_general_dilated(
            h, w,
            window_strides=(1, 1),
            padding=((dil, dil), (dil, dil)),
            rhs_dilation=(dil, dil),
            dimension_numbers=("NCHW", "HWIO", "NCHW"),
        ) + b.reshape(1, -1, 1, 1)
    return x_nchw + h


if __name__ == "__main__":
    key = jax.random.PRNGKey(0)
    xkey, pkey = jax.random.split(key)

    N, C, H, W = 2, 4, 16, 16
    x = jax.random.normal(xkey, (N, C, H, W), jnp.float32)
    params = init_params(pkey, C)

    out = jax.block_until_ready(four_layer_dilated_conv_net_a(x, params))

    ref = _reference_forward(x, params)
    assert out.shape == (N, C, H, W)
    max_err = float(jnp.max(jnp.abs(out - ref)))
    assert jnp.allclose(out, ref, atol=5e-4, rtol=5e-4), max_err

    print("KERNEL_OK")
</pallas_src>

<mosaic_0001>
module attributes {stable_mosaic.version = 11 : i64} {
  func.func @_fused_dilated_convnet_kernel(%arg0: i32, %arg1: memref<1x4x256xf32, #tpu.memory_space<vmem>>, %arg2: memref<4x4x36xf32, #tpu.memory_space<vmem>>, %arg3: memref<4x4x1xf32, #tpu.memory_space<vmem>>, %arg4: memref<1x4x256xf32, #tpu.memory_space<vmem>>, %arg5: memref<36x256xf32, #tpu.memory_space<vmem>>) attributes {dimension_semantics = [#tpu.dimension_semantics<parallel>], iteration_bounds = array<i64: 2>, scalar_prefetch = 0 : i64, scratch_operands = 1 : i64, tpu.core_type = #tpu.core_type<tc>, window_params = [{transform_indices = @transform_0, window_bounds = array<i64: 1, 4, 256>}, {pipeline_mode = #tpu.pipeline_mode<synchronous>, transform_indices = @transform_1, window_bounds = array<i64: 4, 4, 36>}, {pipeline_mode = #tpu.pipeline_mode<synchronous>, transform_indices = @transform_2, window_bounds = array<i64: 4, 4, 1>}, {transform_indices = @transform_3, window_bounds = array<i64: 1, 4, 256>}]} {
    %c0 = arith.constant 0 : index
    %c0_0 = arith.constant 0 : index
    %c0_1 = arith.constant 0 : index
    %0 = vector.load %arg1[%c0, %c0_0, %c0_1] : memref<1x4x256xf32, #tpu.memory_space<vmem>>, vector<1x4x256xf32>
    %1 = vector.shape_cast %0 : vector<1x4x256xf32> to vector<4x256xf32>
    %2 = tpu.iota {dimensions = array<i32: 1>} : vector<4x256xi32>
    %c15_i32 = arith.constant 15 : i32
    %3 = vector.broadcast %c15_i32 : i32 to vector<4x256xi32>
    %4 = arith.andi %2, %3 : vector<4x256xi32>
    %c17_i32 = arith.constant 17 : i32
    %5 = tpu.dynamic_rotate %1 by %c17_i32 dim 1 : vector<4x256xf32>, i32 -> vector<4x256xf32>
    %c16_i32 = arith.constant 16 : i32
    %6 = vector.broadcast %c16_i32 : i32 to vector<4x256xi32>
    %7 = arith.cmpi sge, %2, %6 : vector<4x256xi32>
    %c1_i32 = arith.constant 1 : i32
    %8 = vector.broadcast %c1_i32 : i32 to vector<4x256xi32>
    %9 = arith.cmpi sge, %4, %8 : vector<4x256xi32>
    %10 = arith.andi %7, %9 : vector<4x256xi1>
    %cst = arith.constant 0.000000e+00 : f32
    %11 = vector.broadcast %cst : f32 to vector<4x256xf32>
    %12 = arith.select %10, %5, %11 : vector<4x256xi1>, vector<4x256xf32>
    %c0_2 = arith.constant 0 : index
    %c0_3 = arith.constant 0 : index
    %13 = vector.load %arg5[%c0_2, %c0_3] : memref<36x256xf32, #tpu.memory_space<vmem>>, vector<4x256xf32>
    tpu.vector_store %arg5[%c0_2, %c0_3], %12 {strides = array<i32>} : memref<36x256xf32, #tpu.memory_space<vmem>>, vector<4x256xf32>,
    %c16_i32_4 = arith.constant 16 : i32
    %14 = tpu.dynamic_rotate %1 by %c16_i32_4 dim 1 : vector<4x256xf32>, i32 -> vector<4x256xf32>
    %c16_i32_5 = arith.constant 16 : i32
    %15 = vector.broadcast %c16_i32_5 : i32 to vector<4x256xi32>
    %16 = arith.cmpi sge, %2, %15 : vector<4x256xi32>
    %cst_6 = arith.constant 0.000000e+00 : f32
    %17 = vector.broadcast %cst_6 : f32 to vector<4x256xf32>
    %18 = arith.select %16, %14, %17 : vector<4x256xi1>, vector<4x256xf32>
    %c4 = arith.constant 4 : index
    %c0_7 = arith.constant 0 : index
    %19 = vector.load %arg5[%c4, %c0_7] : memref<36x256xf32, #tpu.memory_space<vmem>>, vector<4x256xf32>
    tpu.vector_store %arg5[%c4, %c0_7], %18 {strides = array<i32>} : memref<36x256xf32, #tpu.memory_space<vmem>>, vector<4x256xf32>,
    %c15_i32_8 = arith.constant 15 : i32
    %20 = tpu.dynamic_rotate %1 by %c15_i32_8 dim 1 : vector<4x256xf32>, i32 -> vector<4x256xf32>
    %c16_i32_9 = arith.constant 16 : i32
    %21 = vector.broadcast %c16_i32_9 : i32 to vector<4x256xi32>
    %22 = arith.cmpi sge, %2, %21 : vector<4x256xi32>
    %c15_i32_10 = arith.constant 15 : i32
    %23 = vector.broadcast %c15_i32_10 : i32 to vector<4x256xi32>
    %24 = arith.cmpi slt, %4, %23 : vector<4x256xi32>
    %25 = arith.andi %22, %24 : vector<4x256xi1>
    %cst_11 = arith.constant 0.000000e+00 : f32
    %26 = vector.broadcast %cst_11 : f32 to vector<4x256xf32>
    %27 = arith.select %25, %20, %26 : vector<4x256xi1>, vector<4x256xf32>
    %c8 = arith.constant 8 : index
    %c0_12 = arith.constant 0 : index
    %28 = vector.load %arg5[%c8, %c0_12] : memref<36x256xf32, #tpu.memory_space<vmem>>, vector<4x256xf32>
    tpu.vector_store %arg5[%c8, %c0_12], %27 {strides = array<i32>} : memref<36x256xf32, #tpu.memory_space<vmem>>, vector<4x256xf32>,
    %c1_i32_13 = arith.constant 1 : i32
    %29 = tpu.dynamic_rotate %1 by %c1_i32_13 dim 1 : vector<4x256xf32>, i32 -> vector<4x256xf32>
    %c1_i32_14 = arith.constant 1 : i32
    %30 = vector.broadcast %c1_i32_14 : i32 to vector<4x256xi32>
    %31 = arith.cmpi sge, %4, %30 : vector<4x256xi32>
    %cst_15 = arith.constant 0.000000e+00 : f32
    %32 = vector.broadcast %cst_15 : f32 to vector<4x256xf32>
    %33 = arith.select %31, %29, %32 : vector<4x256xi1>, vector<4x256xf32>
    %c12 = arith.constant 12 : index
    %c0_16 = arith.constant 0 : index
    %34 = vector.load %arg5[%c12, %c0_16] : memref<36x256xf32, #tpu.memory_space<vmem>>, vector<4x256xf32>
    tpu.vector_store %arg5[%c12, %c0_16], %33 {strides = array<i32>} : memref<36x256xf32, #tpu.memory_space<vmem>>, vector<4x256xf32>,
    %c16 = arith.constant 16 : index
    %c0_17 = arith.constant 0 : index
    %35 = vector.load %arg5[%c16, %c0_17] : memref<36x256xf32, #tpu.memory_space<vmem>>, vector<4x256xf32>
    tpu.vector_store %arg5[%c16, %c0_17], %1 {strides = array<i32>} : memref<36x256xf32, #tpu.memory_space<vmem>>, vector<4x256xf32>,
    %c255_i32 = arith.constant 255 : i32
    %36 = tpu.dynamic_rotate %1 by %c255_i32 dim 1 : vector<4x256xf32>, i32 -> vector<4x256xf32>
    %c15_i32_18 = arith.constant 15 : i32
    %37 = vector.broadcast %c15_i32_18 : i32 to vector<4x256xi32>
    %38 = arith.cmpi slt, %4, %37 : vector<4x256xi32>
    %cst_19 = arith.constant 0.000000e+00 : f32
    %39 = vector.broadcast %cst_19 : f32 to vector<4x256xf32>
    %40 = arith.select %38, %36, %39 : vector<4x256xi1>, vector<4x256xf32>
    %c20 = arith.constant 20 : index
    %c0_20 = arith.constant 0 : index
    %41 = vector.load %arg5[%c20, %c0_20] : memref<36x256xf32, #tpu.memory_space<vmem>>, vector<4x256xf32>
    tpu.vector_store %arg5[%c20, %c0_20], %40 {strides = array<i32>} : memref<36x256xf32, #tpu.memory_space<vmem>>, vector<4x256xf32>,
    %c241_i32 = arith.constant 241 : i32
    %42 = tpu.dynamic_rotate %1 by %c241_i32 dim 1 : vector<4x256xf32>, i32 -> vector<4x256xf32>
    %c240_i32 = arith.constant 240 : i32
    %43 = vector.broadcast %c240_i32 : i32 to vector<4x256xi32>
    %44 = arith.cmpi slt, %2, %43 : vector<4x256xi32>
    %c1_i32_21 = arith.constant 1 : i32
    %45 = vector.broadcast %c1_i32_21 : i32 to vector<4x256xi32>
    %46 = arith.cmpi sge, %4, %45 : vector<4x256xi32>
    %47 = arith.andi %44, %46 : vector<4x256xi1>
    %cst_22 = arith.constant 0.000000e+00 : f32
    %48 = vector.broadcast %cst_22 : f32 to vector<4x256xf32>
    %49 = arith.select %47, %42, %48 : vector<4x256xi1>, vector<4x256xf32>
    %c24 = arith.constant 24 : index
    %c0_23 = arith.constant 0 : index
    %50 = vector.load %arg5[%c24, %c0_23] : memref<36x256xf32, #tpu.memory_space<vmem>>, vector<4x256xf32>
    tpu.vector_store %arg5[%c24, %c0_23], %49 {strides = array<i32>} : memref<36x256xf32, #tpu.memory_space<vmem>>, vector<4x256xf32>,
    %c240_i32_24 = arith.constant 240 : i32
    %51 = tpu.dynamic_rotate %1 by %c240_i32_24 dim 1 : vector<4x256xf32>, i32 -> vector<4x256xf32>
    %c240_i32_25 = arith.constant 240 : i32
    %52 = vector.broadcast %c240_i32_25 : i32 to vector<4x256xi32>
    %53 = arith.cmpi slt, %2, %52 : vector<4x256xi32>
    %cst_26 = arith.constant 0.000000e+00 : f32
    %54 = vector.broadcast %cst_26 : f32 to vector<4x256xf32>
    %55 = arith.select %53, %51, %54 : vector<4x256xi1>, vector<4x256xf32>
    %c28 = arith.constant 28 : index
    %c0_27 = arith.constant 0 : index
    %56 = vector.load %arg5[%c28, %c0_27] : memref<36x256xf32, #tpu.memory_space<vmem>>, vector<4x256xf32>
    tpu.vector_store %arg5[%c28, %c0_27], %55 {strides = array<i32>} : memref<36x256xf32, #tpu.memory_space<vmem>>, vector<4x256xf32>,
    %c239_i32 = arith.constant 239 : i32
    %57 = tpu.dynamic_rotate %1 by %c239_i32 dim 1 : vector<4x256xf32>, i32 -> vector<4x256xf32>
    %c240_i32_28 = arith.constant 240 : i32
    %58 = vector.broadcast %c240_i32_28 : i32 to vector<4x256xi32>
    %59 = arith.cmpi slt, %2, %58 : vector<4x256xi32>
    %c15_i32_29 = arith.constant 15 : i32
    %60 = vector.broadcast %c15_i32_29 : i32 to vector<4x256xi32>
    %61 = arith.cmpi slt, %4, %60 : vector<4x256xi32>
    %62 = arith.andi %59, %61 : vector<4x256xi1>
    %cst_30 = arith.constant 0.000000e+00 : f32
    %63 = vector.broadcast %cst_30 : f32 to vector<4x256xf32>
    %64 = arith.select %62, %57, %63 : vector<4x256xi1>, vector<4x256xf32>
    %c32 = arith.constant 32 : index
    %c0_31 = arith.constant 0 : index
    %65 = vector.load %arg5[%c32, %c0_31] : memref<36x256xf32, #tpu.memory_space<vmem>>, vector<4x256xf32>
    tpu.vector_store %arg5[%c32, %c0_31], %64 {strides = array<i32>} : memref<36x256xf32, #tpu.memory_space<vmem>>, vector<4x256xf32>,
    %c0_32 = arith.constant 0 : index
    %c0_33 = arith.constant 0 : index
    %c0_34 = arith.constant 0 : index
    %66 = vector.load %arg2[%c0_32, %c0_33, %c0_34] : memref<4x4x36xf32, #tpu.memory_space<vmem>>, vector<1x4x36xf32>
    %67 = vector.shape_cast %66 : vector<1x4x36xf32> to vector<4x36xf32>
    %c0_35 = arith.constant 0 : index
    %c0_36 = arith.constant 0 : index
    %68 = vector.load %arg5[%c0_35, %c0_36] : memref<36x256xf32, #tpu.memory_space<vmem>>, vector<36x256xf32>
    %cst_37 = arith.constant dense<0.000000e+00> : vector<4x256xf32>
    %69 = tpu.matmul %67, %68, %cst_37 {dimension_numbers = #tpu.dot_dimension_numbers<[1], [0], [0], [1], [0, 0, 1, 1], [], []>} : vector<4x36xf32>, vector<36x256xf32>, vector<4x256xf32> -> vector<4x256xf32>
    %c0_38 = arith.constant 0 : index
    %c0_39 = arith.constant 0 : index
    %c0_40 = arith.constant 0 : index
    %70 = vector.load %arg3[%c0_38, %c0_39, %c0_40] : memref<4x4x1xf32, #tpu.memory_space<vmem>>, vector<1x4x1xf32>
    %71 = vector.shape_cast %70 : vector<1x4x1xf32> to vector<4x1xf32>
    %72 = vector.broadcast %71 : vector<4x1xf32> to vector<4x256xf32>
    %73 = arith.addf %69, %72 : vector<4x256xf32>
    %c34_i32 = arith.constant 34 : i32
    %74 = tpu.dynamic_rotate %73 by %c34_i32 dim 1 : vector<4x256xf32>, i32 -> vector<4x256xf32>
    %c32_i32 = arith.constant 32 : i32
    %75 = vector.broadcast %c32_i32 : i32 to vector<4x256xi32>
    %76 = arith.cmpi sge, %2, %75 : vector<4x256xi32>
    %c2_i32 = arith.constant 2 : i32
    %77 = vector.broadcast %c2_i32 : i32 to vector<4x256xi32>
    %78 = arith.cmpi sge, %4, %77 : vector<4x256xi32>
    %79 = arith.andi %76, %78 : vector<4x256xi1>
    %cst_41 = arith.constant 0.000000e+00 : f32
    %80 = vector.broadcast %cst_41 : f32 to vector<4x256xf32>
    %81 = arith.select %79, %74, %80 : vector<4x256xi1>, vector<4x256xf32>
    %c0_42 = arith.constant 0 : index
    %c0_43 = arith.constant 0 : index
    %82 = vector.load %arg5[%c0_42, %c0_43] : memref<36x256xf32, #tpu.memory_space<vmem>>, vector<4x256xf32>
    tpu.vector_store %arg5[%c0_42, %c0_43], %81 {strides = array<i32>} : memref<36x256xf32, #tpu.memory_space<vmem>>, vector<4x256xf32>,
    %c32_i32_44 = arith.constant 32 : i32
    %83 = tpu.dynamic_rotate %73 by %c32_i32_44 dim 1 : vector<4x256xf32>, i32 -> vector<4x256xf32>
    %c32_i32_45 = arith.constant 32 : i32
    %84 = vector.broadcast %c32_i32_45 : i32 to vector<4x256xi32>
    %85 = arith.cmpi sge, %2, %84 : vector<4x256xi32>
    %cst_46 = arith.constant 0.000000e+00 : f32
    %86 = vector.broadcast %cst_46 : f32 to vector<4x256xf32>
    %87 = arith.select %85, %83, %86 : vector<4x256xi1>, vector<4x256xf32>
    %c4_47 = arith.constant 4 : index
    %c0_48 = arith.constant 0 : index
    %88 = vector.load %arg5[%c4_47, %c0_48] : memref<36x256xf32, #tpu.memory_space<vmem>>, vector<4x256xf32>
    tpu.vector_store %arg5[%c4_47, %c0_48], %87 {strides = array<i32>} : memref<36x256xf32, #tpu.memory_space<vmem>>, vector<4x256xf32>,
    %c30_i32 = arith.constant 30 : i32
    %89 = tpu.dynamic_rotate %73 by %c30_i32 dim 1 : vector<4x256xf32>, i32 -> vector<4x256xf32>
    %c32_i32_49 = arith.constant 32 : i32
    %90 = vector.broadcast %c32_i32_49 : i32 to vector<4x256xi32>
    %91 = arith.cmpi sge, %2, %90 : vector<4x256xi32>
    %c14_i32 = arith.constant 14 : i32
    %92 = vector.broadcast %c14_i32 : i32 to vector<4x256xi32>
    %93 = arith.cmpi slt, %4, %92 : vector<4x256xi32>
    %94 = arith.andi %91, %93 : vector<4x256xi1>
    %cst_50 = arith.constant 0.000000e+00 : f32
    %95 = vector.broadcast %cst_50 : f32 to vector<4x256xf32>
    %96 = arith.select %94, %89, %95 : vector<4x256xi1>, vector<4x256xf32>
    %c8_51 = arith.constant 8 : index
    %c0_52 = arith.constant 0 : index
    %97 = vector.load %arg5[%c8_51, %c0_52] : memref<36x256xf32, #tpu.memory_space<vmem>>, vector<4x256xf32>
    tpu.vector_store %arg5[%c8_51, %c0_52], %96 {strides = array<i32>} : memref<36x256xf32, #tpu.memory_space<vmem>>, vector<4x256xf32>,
    %c2_i32_53 = arith.constant 2 : i32
    %98 = tpu.dynamic_rotate %73 by %c2_i32_53 dim 1 : vector<4x256xf32>, i32 -> vector<4x256xf32>
    %c2_i32_54 = arith.constant 2 : i32
    %99 = vector.broadcast %c2_i32_54 : i32 to vector<4x256xi32>
    %100 = arith.cmpi sge, %4, %99 : vector<4x256xi32>
    %cst_55 = arith.constant 0.000000e+00 : f32
    %101 = vector.broadcast %cst_55 : f32 to vector<4x256xf32>
    %102 = arith.select %100, %98, %101 : vector<4x256xi1>, vector<4x256xf32>
    %c12_56 = arith.constant 12 : index
    %c0_57 = arith.constant 0 : index
    %103 = vector.load %arg5[%c12_56, %c0_57] : memref<36x256xf32, #tpu.memory_space<vmem>>, vector<4x256xf32>
    tpu.vector_store %arg5[%c12_56, %c0_57], %102 {strides = array<i32>} : memref<36x256xf32, #tpu.memory_space<vmem>>, vector<4x256xf32>,
    %c16_58 = arith.constant 16 : index
    %c0_59 = arith.constant 0 : index
    %104 = vector.load %arg5[%c16_58, %c0_59] : memref<36x256xf32, #tpu.memory_space<vmem>>, vector<4x256xf32>
    tpu.vector_store %arg5[%c16_58, %c0_59], %73 {strides = array<i32>} : memref<36x256xf32, #tpu.memory_space<vmem>>, vector<4x256xf32>,
    %c254_i32 = arith.constant 254 : i32
    %105 = tpu.dynamic_rotate %73 by %c254_i32 dim 1 : vector<4x256xf32>, i32 -> vector<4x256xf32>
    %c14_i32_60 = arith.constant 14 : i32
    %106 = vector.broadcast %c14_i32_60 : i32 to vector<4x256xi32>
    %107 = arith.cmpi slt, %4, %106 : vector<4x256xi32>
    %cst_61 = arith.constant 0.000000e+00 : f32
    %108 = vector.broadcast %cst_61 : f32 to vector<4x256xf32>
    %109 = arith.select %107, %105, %108 : vector<4x256xi1>, vector<4x256xf32>
    %c20_62 = arith.constant 20 : index
    %c0_63 = arith.constant 0 : index
    %110 = vector.load %arg5[%c20_62, %c0_63] : memref<36x256xf32, #tpu.memory_space<vmem>>, vector<4x256xf32>
    tpu.vector_store %arg5[%c20_62, %c0_63], %109 {strides = array<i32>} : memref<36x256xf32, #tpu.memory_space<vmem>>, vector<4x256xf32>,
    %c226_i32 = arith.constant 226 : i32
    %111 = tpu.dynamic_rotate %73 by %c226_i32 dim 1 : vector<4x256xf32>, i32 -> vector<4x256xf32>
    %c224_i32 = arith.constant 224 : i32
    %112 = vector.broadcast %c224_i32 : i32 to vector<4x256xi32>
    %113 = arith.cmpi slt, %2, %112 : vector<4x256xi32>
    %c2_i32_64 = arith.constant 2 : i32
    %114 = vector.broadcast %c2_i32_64 : i32 to vector<4x256xi32>
    %115 = arith.cmpi sge, %4, %114 : vector<4x256xi32>
    %116 = arith.andi %113, %115 : vector<4x256xi1>
    %cst_65 = arith.constant 0.000000e+00 : f32
    %117 = vector.broadcast %cst_65 : f32 to vector<4x256xf32>
    %118 = arith.select %116, %111, %117 : vector<4x256xi1>, vector<4x256xf32>
    %c24_66 = arith.constant 24 : index
    %c0_67 = arith.constant 0 : index
    %119 = vector.load %arg5[%c24_66, %c0_67] : memref<36x256xf32, #tpu.memory_space<vmem>>, vector<4x256xf32>
    tpu.vector_store %arg5[%c24_66, %c0_67], %118 {strides = array<i32>} : memref<36x256xf32, #tpu.memory_space<vmem>>, vector<4x256xf32>,
    %c224_i32_68 = arith.constant 224 : i32
    %120 = tpu.dynamic_rotate %73 by %c224_i32_68 dim 1 : vector<4x256xf32>, i32 -> vector<4x256xf32>
    %c224_i32_69 = arith.constant 224 : i32
    %121 = vector.broadcast %c224_i32_69 : i32 to vector<4x256xi32>
    %122 = arith.cmpi slt, %2, %121 : vector<4x256xi32>
    %cst_70 = arith.constant 0.000000e+00 : f32
    %123 = vector.broadcast %cst_70 : f32 to vector<4x256xf32>
    %124 = arith.select %122, %120, %123 : vector<4x256xi1>, vector<4x256xf32>
    %c28_71 = arith.constant 28 : index
    %c0_72 = arith.constant 0 : index
    %125 = vector.load %arg5[%c28_71, %c0_72] : memref<36x256xf32, #tpu.memory_space<vmem>>, vector<4x256xf32>
    tpu.vector_store %arg5[%c28_71, %c0_72], %124 {strides = array<i32>} : memref<36x256xf32, #tpu.memory_space<vmem>>, vector<4x256xf32>,
    %c222_i32 = arith.constant 222 : i32
    %126 = tpu.dynamic_rotate %73 by %c222_i32 dim 1 : vector<4x256xf32>, i32 -> vector<4x256xf32>
    %c224_i32_73 = arith.constant 224 : i32
    %127 = vector.broadcast %c224_i32_73 : i32 to vector<4x256xi32>
    %128 = arith.cmpi slt, %2, %127 : vector<4x256xi32>
    %c14_i32_74 = arith.constant 14 : i32
    %129 = vector.broadcast %c14_i32_74 : i32 to vector<4x256xi32>
    %130 = arith.cmpi slt, %4, %129 : vector<4x256xi32>
    %131 = arith.andi %128, %130 : vector<4x256xi1>
    %cst_75 = arith.constant 0.000000e+00 : f32
    %132 = vector.broadcast %cst_75 : f32 to vector<4x256xf32>
    %133 = arith.select %131, %126, %132 : vector<4x256xi1>, vector<4x256xf32>
    %c32_76 = arith.constant 32 : index
    %c0_77 = arith.constant 0 : index
    %134 = vector.load %arg5[%c32_76, %c0_77] : memref<36x256xf32, #tpu.memory_space<vmem>>, vector<4x256xf32>
    tpu.vector_store %arg5[%c32_76, %c0_77], %133 {strides = array<i32>} : memref<36x256xf32, #tpu.memory_space<vmem>>, vector<4x256xf32>,
    %c1 = arith.constant 1 : index
    %c0_78 = arith.constant 0 : index
    %c0_79 = arith.constant 0 : index
    %135 = vector.load %arg2[%c1, %c0_78, %c0_79] : memref<4x4x36xf32, #tpu.memory_space<vmem>>, vector<1x4x36xf32>
    %136 = vector.shape_cast %135 : vector<1x4x36xf32> to vector<4x36xf32>
    %c0_80 = arith.constant 0 : index
    %c0_81 = arith.constant 0 : index
    %137 = vector.load %arg5[%c0_80, %c0_81] : memref<36x256xf32, #tpu.memory_space<vmem>>, vector<36x256xf32>
    %cst_82 = arith.constant dense<0.000000e+00> : vector<4x256xf32>
    %138 = tpu.matmul %136, %137, %cst_82 {dimension_numbers = #tpu.dot_dimension_numbers<[1], [0], [0], [1], [0, 0, 1, 1], [], []>} : vector<4x36xf32>, vector<36x256xf32>, vector<4x256xf32> -> vector<4x256xf32>
    %c1_83 = arith.constant 1 : index
    %c0_84 = arith.constant 0 : index
    %c0_85 = arith.constant 0 : index
    %139 = vector.load %arg3[%c1_83, %c0_84, %c0_85] : memref<4x4x1xf32, #tpu.memory_space<vmem>>, vector<1x4x1xf32>
    %140 = vector.shape_cast %139 : vector<1x4x1xf32> to vector<4x1xf32>
    %141 = vector.broadcast %140 : vector<4x1xf32> to vector<4x256xf32>
    %142 = arith.addf %138, %141 : vector<4x256xf32>
    %c85_i32 = arith.constant 85 : i32
    %143 = tpu.dynamic_rotate %142 by %c85_i32 dim 1 : vector<4x256xf32>, i32 -> vector<4x256xf32>
    %c80_i32 = arith.constant 80 : i32
    %144 = vector.broadcast %c80_i32 : i32 to vector<4x256xi32>
    %145 = arith.cmpi sge, %2, %144 : vector<4x256xi32>
    %c5_i32 = arith.constant 5 : i32
    %146 = vector.broadcast %c5_i32 : i32 to vector<4x256xi32>
    %147 = arith.cmpi sge, %4, %146 : vector<4x256xi32>
    %148 = arith.andi %145, %147 : vector<4x256xi1>
    %cst_86 = arith.constant 0.000000e+00 : f32
    %149 = vector.broadcast %cst_86 : f32 to vector<4x256xf32>
    %150 = arith.select %148, %143, %149 : vector<4x256xi1>, vector<4x256xf32>
    %c0_87 = arith.constant 0 : index
    %c0_88 = arith.constant 0 : index
    %151 = vector.load %arg5[%c0_87, %c0_88] : memref<36x256xf32, #tpu.memory_space<vmem>>, vector<4x256xf32>
    tpu.vector_store %arg5[%c0_87, %c0_88], %150 {strides = array<i32>} : memref<36x256xf32, #tpu.memory_space<vmem>>, vector<4x256xf32>,
    %c80_i32_89 = arith.constant 80 : i32
    %152 = tpu.dynamic_rotate %142 by %c80_i32_89 dim 1 : vector<4x256xf32>, i32 -> vector<4x256xf32>
    %c80_i32_90 = arith.constant 80 : i32
    %153 = vector.broadcast %c80_i32_90 : i32 to vector<4x256xi32>
    %154 = arith.cmpi sge, %2, %153 : vector<4x256xi32>
    %cst_91 = arith.constant 0.000000e+00 : f32
    %155 = vector.broadcast %cst_91 : f32 to vector<4x256xf32>
    %156 = arith.select %154, %152, %155 : vector<4x256xi1>, vector<4x256xf32>
    %c4_92 = arith.constant 4 : index
    %c0_93 = arith.constant 0 : index
    %157 = vector.load %arg5[%c4_92, %c0_93] : memref<36x256xf32, #tpu.memory_space<vmem>>, vector<4x256xf32>
    tpu.vector_store %arg5[%c4_92, %c0_93], %156 {strides = array<i32>} : memref<36x256xf32, #tpu.memory_space<vmem>>, vector<4x256xf32>,
    %c75_i32 = arith.constant 75 : i32
    %158 = tpu.dynamic_rotate %142 by %c75_i32 dim 1 : vector<4x256xf32>, i32 -> vector<4x256xf32>
    %c80_i32_94 = arith.constant 80 : i32
    %159 = vector.broadcast %c80_i32_94 : i32 to vector<4x256xi32>
    %160 = arith.cmpi sge, %2, %159 : vector<4x256xi32>
    %c11_i32 = arith.constant 11 : i32
    %161 = vector.broadcast %c11_i32 : i32 to vector<4x256xi32>
    %162 = arith.cmpi slt, %4, %161 : vector<4x256xi32>
    %163 = arith.andi %160, %162 : vector<4x256xi1>
    %cst_95 = arith.constant 0.000000e+00 : f32
    %164 = vector.broadcast %cst_95 : f32 to vector<4x256xf32>
    %165 = arith.select %163, %158, %164 : vector<4x256xi1>, vector<4x256xf32>
    %c8_96 = arith.constant 8 : index
    %c0_97 = arith.constant 0 : index
    %166 = vector.load %arg5[%c8_96, %c0_97] : memref<36x256xf32, #tpu.memory_space<vmem>>, vector<4x256xf32>
    tpu.vector_store %arg5[%c8_96, %c0_97], %165 {strides = array<i32>} : memref<36x256xf32, #tpu.memory_space<vmem>>, vector<4x256xf32>,
    %c5_i32_98 = arith.constant 5 : i32
    %167 = tpu.dynamic_rotate %142 by %c5_i32_98 dim 1 : vector<4x256xf32>, i32 -> vector<4x256xf32>
    %c5_i32_99 = arith.constant 5 : i32
    %168 = vector.broadcast %c5_i32_99 : i32 to vector<4x256xi32>
    %169 = arith.cmpi sge, %4, %168 : vector<4x256xi32>
    %cst_100 = arith.constant 0.000000e+00 : f32
    %170 = vector.broadcast %cst_100 : f32 to vector<4x256xf32>
    %171 = arith.select %169, %167, %170 : vector<4x256xi1>, vector<4x256xf32>
    %c12_101 = arith.constant 12 : index
    %c0_102 = arith.constant 0 : index
    %172 = vector.load %arg5[%c12_101, %c0_102] : memref<36x256xf32, #tpu.memory_space<vmem>>, vector<4x256xf32>
    tpu.vector_store %arg5[%c12_101, %c0_102], %171 {strides = array<i32>} : memref<36x256xf32, #tpu.memory_space<vmem>>, vector<4x256xf32>,
    %c16_103 = arith.constant 16 : index
    %c0_104 = arith.constant 0 : index
    %173 = vector.load %arg5[%c16_103, %c0_104] : memref<36x256xf32, #tpu.memory_space<vmem>>, vector<4x256xf32>
    tpu.vector_store %arg5[%c16_103, %c0_104], %142 {strides = array<i32>} : memref<36x256xf32, #tpu.memory_space<vmem>>, vector<4x256xf32>,
    %c251_i32 = arith.constant 251 : i32
    %174 = tpu.dynamic_rotate %142 by %c251_i32 dim 1 : vector<4x256xf32>, i32 -> vector<4x256xf32>
    %c11_i32_105 = arith.constant 11 : i32
    %175 = vector.broadcast %c11_i32_105 : i32 to vector<4x256xi32>
    %176 = arith.cmpi slt, %4, %175 : vector<4x256xi32>
    %cst_106 = arith.constant 0.000000e+00 : f32
    %177 = vector.broadcast %cst_106 : f32 to vector<4x256xf32>
    %178 = arith.select %176, %174, %177 : vector<4x256xi1>, vector<4x256xf32>
    %c20_107 = arith.constant 20 : index
    %c0_108 = arith.constant 0 : index
    %179 = vector.load %arg5[%c20_107, %c0_108] : memref<36x256xf32, #tpu.memory_space<vmem>>, vector<4x256xf32>
    tpu.vector_store %arg5[%c20_107, %c0_108], %178 {strides = array<i32>} : memref<36x256xf32, #tpu.memory_space<vmem>>, vector<4x256xf32>,
    %c181_i32 = arith.constant 181 : i32
    %180 = tpu.dynamic_rotate %142 by %c181_i32 dim 1 : vector<4x256xf32>, i32 -> vector<4x256xf32>
    %c176_i32 = arith.constant 176 : i32
    %181 = vector.broadcast %c176_i32 : i32 to vector<4x256xi32>
    %182 = arith.cmpi slt, %2, %181 : vector<4x256xi32>
    %c5_i32_109 = arith.constant 5 : i32
    %183 = vector.broadcast %c5_i32_109 : i32 to vector<4x256xi32>
    %184 = arith.cmpi sge, %4, %183 : vector<4x256xi32>
    %185 = arith.andi %182, %184 : vector<4x256xi1>
    %cst_110 = arith.constant 0.000000e+00 : f32
    %186 = vector.broadcast %cst_110 : f32 to vector<4x256xf32>
    %187 = arith.select %185, %180, %186 : vector<4x256xi1>, vector<4x256xf32>
    %c24_111 = arith.constant 24 : index
    %c0_112 = arith.constant 0 : index
    %188 = vector.load %arg5[%c24_111, %c0_112] : memref<36x256xf32, #tpu.memory_space<vmem>>, vector<4x256xf32>
    tpu.vector_store %arg5[%c24_111, %c0_112], %187 {strides = array<i32>} : memref<36x256xf32, #tpu.memory_space<vmem>>, vector<4x256xf32>,
    %c176_i32_113 = arith.constant 176 : i32
    %189 = tpu.dynamic_rotate %142 by %c176_i32_113 dim 1 : vector<4x256xf32>, i32 -> vector<4x256xf32>
    %c176_i32_114 = arith.constant 176 : i32
    %190 = vector.broadcast %c176_i32_114 : i32 to vector<4x256xi32>
    %191 = arith.cmpi slt, %2, %190 : vector<4x256xi32>
    %cst_115 = arith.constant 0.000000e+00 : f32
    %192 = vector.broadcast %cst_115 : f32 to vector<4x256xf32>
    %193 = arith.select %191, %189, %192 : vector<4x256xi1>, vector<4x256xf32>
    %c28_116 = arith.constant 28 : index
    %c0_117 = arith.constant 0 : index
    %194 = vector.load %arg5[%c28_116, %c0_117] : memref<36x256xf32, #tpu.memory_space<vmem>>, vector<4x256xf32>
    tpu.vector_store %arg5[%c28_116, %c0_117], %193 {strides = array<i32>} : memref<36x256xf32, #tpu.memory_space<vmem>>, vector<4x256xf32>,
    %c171_i32 = arith.constant 171 : i32
    %195 = tpu.dynamic_rotate %142 by %c171_i32 dim 1 : vector<4x256xf32>, i32 -> vector<4x256xf32>
    %c176_i32_118 = arith.constant 176 : i32
    %196 = vector.broadcast %c176_i32_118 : i32 to vector<4x256xi32>
    %197 = arith.cmpi slt, %2, %196 : vector<4x256xi32>
    %c11_i32_119 = arith.constant 11 : i32
    %198 = vector.broadcast %c11_i32_119 : i32 to vector<4x256xi32>
    %199 = arith.cmpi slt, %4, %198 : vector<4x256xi32>
    %200 = arith.andi %197, %199 : vector<4x256xi1>
    %cst_120 = arith.constant 0.000000e+00 : f32
    %201 = vector.broadcast %cst_120 : f32 to vector<4x256xf32>
    %202 = arith.select %200, %195, %201 : vector<4x256xi1>, vector<4x256xf32>
    %c32_121 = arith.constant 32 : index
    %c0_122 = arith.constant 0 : index
    %203 = vector.load %arg5[%c32_121, %c0_122] : memref<36x256xf32, #tpu.memory_space<vmem>>, vector<4x256xf32>
    tpu.vector_store %arg5[%c32_121, %c0_122], %202 {strides = array<i32>} : memref<36x256xf32, #tpu.memory_space<vmem>>, vector<4x256xf32>,
    %c2 = arith.constant 2 : index
    %c0_123 = arith.constant 0 : index
    %c0_124 = arith.constant 0 : index
    %204 = vector.load %arg2[%c2, %c0_123, %c0_124] : memref<4x4x36xf32, #tpu.memory_space<vmem>>, vector<1x4x36xf32>
    %205 = vector.shape_cast %204 : vector<1x4x36xf32> to vector<4x36xf32>
    %c0_125 = arith.constant 0 : index
    %c0_126 = arith.constant 0 : index
    %206 = vector.load %arg5[%c0_125, %c0_126] : memref<36x256xf32, #tpu.memory_space<vmem>>, vector<36x256xf32>
    %cst_127 = arith.constant dense<0.000000e+00> : vector<4x256xf32>
    %207 = tpu.matmul %205, %206, %cst_127 {dimension_numbers = #tpu.dot_dimension_numbers<[1], [0], [0], [1], [0, 0, 1, 1], [], []>} : vector<4x36xf32>, vector<36x256xf32>, vector<4x256xf32> -> vector<4x256xf32>
    %c2_128 = arith.constant 2 : index
    %c0_129 = arith.constant 0 : index
    %c0_130 = arith.constant 0 : index
    %208 = vector.load %arg3[%c2_128, %c0_129, %c0_130] : memref<4x4x1xf32, #tpu.memory_space<vmem>>, vector<1x4x1xf32>
    %209 = vector.shape_cast %208 : vector<1x4x1xf32> to vector<4x1xf32>
    %210 = vector.broadcast %209 : vector<4x1xf32> to vector<4x256xf32>
    %211 = arith.addf %207, %210 : vector<4x256xf32>
    %c136_i32 = arith.constant 136 : i32
    %212 = tpu.dynamic_rotate %211 by %c136_i32 dim 1 : vector<4x256xf32>, i32 -> vector<4x256xf32>
    %c128_i32 = arith.constant 128 : i32
    %213 = vector.broadcast %c128_i32 : i32 to vector<4x256xi32>
    %214 = arith.cmpi sge, %2, %213 : vector<4x256xi32>
    %c8_i32 = arith.constant 8 : i32
    %215 = vector.broadcast %c8_i32 : i32 to vector<4x256xi32>
    %216 = arith.cmpi sge, %4, %215 : vector<4x256xi32>
    %217 = arith.andi %214, %216 : vector<4x256xi1>
    %cst_131 = arith.constant 0.000000e+00 : f32
    %218 = vector.broadcast %cst_131 : f32 to vector<4x256xf32>
    %219 = arith.select %217, %212, %218 : vector<4x256xi1>, vector<4x256xf32>
    %c0_132 = arith.constant 0 : index
    %c0_133 = arith.constant 0 : index
    %220 = vector.load %arg5[%c0_132, %c0_133] : memref<36x256xf32, #tpu.memory_space<vmem>>, vector<4x256xf32>
    tpu.vector_store %arg5[%c0_132, %c0_133], %219 {strides = array<i32>} : memref<36x256xf32, #tpu.memory_space<vmem>>, vector<4x256xf32>,
    %c128_i32_134 = arith.constant 128 : i32
    %221 = tpu.dynamic_rotate %211 by %c128_i32_134 dim 1 : vector<4x256xf32>, i32 -> vector<4x256xf32>
    %c128_i32_135 = arith.constant 128 : i32
    %222 = vector.broadcast %c128_i32_135 : i32 to vector<4x256xi32>
    %223 = arith.cmpi sge, %2, %222 : vector<4x256xi32>
    %cst_136 = arith.constant 0.000000e+00 : f32
    %224 = vector.broadcast %cst_136 : f32 to vector<4x256xf32>
    %225 = arith.select %223, %221, %224 : vector<4x256xi1>, vector<4x256xf32>
    %c4_137 = arith.constant 4 : index
    %c0_138 = arith.constant 0 : index
    %226 = vector.load %arg5[%c4_137, %c0_138] : memref<36x256xf32, #tpu.memory_space<vmem>>, vector<4x256xf32>
    tpu.vector_store %arg5[%c4_137, %c0_138], %225 {strides = array<i32>} : memref<36x256xf32, #tpu.memory_space<vmem>>, vector<4x256xf32>,
    %c120_i32 = arith.constant 120 : i32
    %227 = tpu.dynamic_rotate %211 by %c120_i32 dim 1 : vector<4x256xf32>, i32 -> vector<4x256xf32>
    %c128_i32_139 = arith.constant 128 : i32
    %228 = vector.broadcast %c128_i32_139 : i32 to vector<4x256xi32>
    %229 = arith.cmpi sge, %2, %228 : vector<4x256xi32>
    %c8_i32_140 = arith.constant 8 : i32
    %230 = vector.broadcast %c8_i32_140 : i32 to vector<4x256xi32>
    %231 = arith.cmpi slt, %4, %230 : vector<4x256xi32>
    %232 = arith.andi %229, %231 : vector<4x256xi1>
    %cst_141 = arith.constant 0.000000e+00 : f32
    %233 = vector.broadcast %cst_141 : f32 to vector<4x256xf32>
    %234 = arith.select %232, %227, %233 : vector<4x256xi1>, vector<4x256xf32>
    %c8_142 = arith.constant 8 : index
    %c0_143 = arith.constant 0 : index
    %235 = vector.load %arg5[%c8_142, %c0_143] : memref<36x256xf32, #tpu.memory_space<vmem>>, vector<4x256xf32>
    tpu.vector_store %arg5[%c8_142, %c0_143], %234 {strides = array<i32>} : memref<36x256xf32, #tpu.memory_space<vmem>>, vector<4x256xf32>,
    %c8_i32_144 = arith.constant 8 : i32
    %236 = tpu.dynamic_rotate %211 by %c8_i32_144 dim 1 : vector<4x256xf32>, i32 -> vector<4x256xf32>
    %c8_i32_145 = arith.constant 8 : i32
    %237 = vector.broadcast %c8_i32_145 : i32 to vector<4x256xi32>
    %238 = arith.cmpi sge, %4, %237 : vector<4x256xi32>
    %cst_146 = arith.constant 0.000000e+00 : f32
    %239 = vector.broadcast %cst_146 : f32 to vector<4x256xf32>
    %240 = arith.select %238, %236, %239 : vector<4x256xi1>, vector<4x256xf32>
    %c12_147 = arith.constant 12 : index
    %c0_148 = arith.constant 0 : index
    %241 = vector.load %arg5[%c12_147, %c0_148] : memref<36x256xf32, #tpu.memory_space<vmem>>, vector<4x256xf32>
    tpu.vector_store %arg5[%c12_147, %c0_148], %240 {strides = array<i32>} : memref<36x256xf32, #tpu.memory_space<vmem>>, vector<4x256xf32>,
    %c16_149 = arith.constant 16 : index
    %c0_150 = arith.constant 0 : index
    %242 = vector.load %arg5[%c16_149, %c0_150] : memref<36x256xf32, #tpu.memory_space<vmem>>, vector<4x256xf32>
    tpu.vector_store %arg5[%c16_149, %c0_150], %211 {strides = array<i32>} : memref<36x256xf32, #tpu.memory_space<vmem>>, vector<4x256xf32>,
    %c248_i32 = arith.constant 248 : i32
    %243 = tpu.dynamic_rotate %211 by %c248_i32 dim 1 : vector<4x256xf32>, i32 -> vector<4x256xf32>
    %c8_i32_151 = arith.constant 8 : i32
    %244 = vector.broadcast %c8_i32_151 : i32 to vector<4x256xi32>
    %245 = arith.cmpi slt, %4, %244 : vector<4x256xi32>
    %cst_152 = arith.constant 0.000000e+00 : f32
    %246 = vector.broadcast %cst_152 : f32 to vector<4x256xf32>
    %247 = arith.select %245, %243, %246 : vector<4x256xi1>, vector<4x256xf32>
    %c20_153 = arith.constant 20 : index
    %c0_154 = arith.constant 0 : index
    %248 = vector.load %arg5[%c20_153, %c0_154] : memref<36x256xf32, #tpu.memory_space<vmem>>, vector<4x256xf32>
    tpu.vector_store %arg5[%c20_153, %c0_154], %247 {strides = array<i32>} : memref<36x256xf32, #tpu.memory_space<vmem>>, vector<4x256xf32>,
    %c136_i32_155 = arith.constant 136 : i32
    %249 = tpu.dynamic_rotate %211 by %c136_i32_155 dim 1 : vector<4x256xf32>, i32 -> vector<4x256xf32>
    %c128_i32_156 = arith.constant 128 : i32
    %250 = vector.broadcast %c128_i32_156 : i32 to vector<4x256xi32>
    %251 = arith.cmpi slt, %2, %250 : vector<4x256xi32>
    %c8_i32_157 = arith.constant 8 : i32
    %252 = vector.broadcast %c8_i32_157 : i32 to vector<4x256xi32>
    %253 = arith.cmpi sge, %4, %252 : vector<4x256xi32>
    %254 = arith.andi %251, %253 : vector<4x256xi1>
    %cst_158 = arith.constant 0.000000e+00 : f32
    %255 = vector.broadcast %cst_158 : f32 to vector<4x256xf32>
    %256 = arith.select %254, %249, %255 : vector<4x256xi1>, vector<4x256xf32>
    %c24_159 = arith.constant 24 : index
    %c0_160 = arith.constant 0 : index
    %257 = vector.load %arg5[%c24_159, %c0_160] : memref<36x256xf32, #tpu.memory_space<vmem>>, vector<4x256xf32>
    tpu.vector_store %arg5[%c24_159, %c0_160], %256 {strides = array<i32>} : memref<36x256xf32, #tpu.memory_space<vmem>>, vector<4x256xf32>,
    %c128_i32_161 = arith.constant 128 : i32
    %258 = tpu.dynamic_rotate %211 by %c128_i32_161 dim 1 : vector<4x256xf32>, i32 -> vector<4x256xf32>
    %c128_i32_162 = arith.constant 128 : i32
    %259 = vector.broadcast %c128_i32_162 : i32 to vector<4x256xi32>
    %260 = arith.cmpi slt, %2, %259 : vector<4x256xi32>
    %cst_163 = arith.constant 0.000000e+00 : f32
    %261 = vector.broadcast %cst_163 : f32 to vector<4x256xf32>
    %262 = arith.select %260, %258, %261 : vector<4x256xi1>, vector<4x256xf32>
    %c28_164 = arith.constant 28 : index
    %c0_165 = arith.constant 0 : index
    %263 = vector.load %arg5[%c28_164, %c0_165] : memref<36x256xf32, #tpu.memory_space<vmem>>, vector<4x256xf32>
    tpu.vector_store %arg5[%c28_164, %c0_165], %262 {strides = array<i32>} : memref<36x256xf32, #tpu.memory_space<vmem>>, vector<4x256xf32>,
    %c120_i32_166 = arith.constant 120 : i32
    %264 = tpu.dynamic_rotate %211 by %c120_i32_166 dim 1 : vector<4x256xf32>, i32 -> vector<4x256xf32>
    %c128_i32_167 = arith.constant 128 : i32
    %265 = vector.broadcast %c128_i32_167 : i32 to vector<4x256xi32>
    %266 = arith.cmpi slt, %2, %265 : vector<4x256xi32>
    %c8_i32_168 = arith.constant 8 : i32
    %267 = vector.broadcast %c8_i32_168 : i32 to vector<4x256xi32>
    %268 = arith.cmpi slt, %4, %267 : vector<4x256xi32>
    %269 = arith.andi %266, %268 : vector<4x256xi1>
    %cst_169 = arith.constant 0.000000e+00 : f32
    %270 = vector.broadcast %cst_169 : f32 to vector<4x256xf32>
    %271 = arith.select %269, %264, %270 : vector<4x256xi1>, vector<4x256xf32>
    %c32_170 = arith.constant 32 : index
    %c0_171 = arith.constant 0 : index
    %272 = vector.load %arg5[%c32_170, %c0_171] : memref<36x256xf32, #tpu.memory_space<vmem>>, vector<4x256xf32>
    tpu.vector_store %arg5[%c32_170, %c0_171], %271 {strides = array<i32>} : memref<36x256xf32, #tpu.memory_space<vmem>>, vector<4x256xf32>,
    %c3 = arith.constant 3 : index
    %c0_172 = arith.constant 0 : index
    %c0_173 = arith.constant 0 : index
    %273 = vector.load %arg2[%c3, %c0_172, %c0_173] : memref<4x4x36xf32, #tpu.memory_space<vmem>>, vector<1x4x36xf32>
    %274 = vector.shape_cast %273 : vector<1x4x36xf32> to vector<4x36xf32>
    %c0_174 = arith.constant 0 : index
    %c0_175 = arith.constant 0 : index
    %275 = vector.load %arg5[%c0_174, %c0_175] : memref<36x256xf32, #tpu.memory_space<vmem>>, vector<36x256xf32>
    %cst_176 = arith.constant dense<0.000000e+00> : vector<4x256xf32>
    %276 = tpu.matmul %274, %275, %cst_176 {dimension_numbers = #tpu.dot_dimension_numbers<[1], [0], [0], [1], [0, 0, 1, 1], [], []>} : vector<4x36xf32>, vector<36x256xf32>, vector<4x256xf32> -> vector<4x256xf32>
    %c3_177 = arith.constant 3 : index
    %c0_178 = arith.constant 0 : index
    %c0_179 = arith.constant 0 : index
    %277 = vector.load %arg3[%c3_177, %c0_178, %c0_179] : memref<4x4x1xf32, #tpu.memory_space<vmem>>, vector<1x4x1xf32>
    %278 = vector.shape_cast %277 : vector<1x4x1xf32> to vector<4x1xf32>
    %279 = vector.broadcast %278 : vector<4x1xf32> to vector<4x256xf32>
    %280 = arith.addf %276, %279 : vector<4x256xf32>
    %281 = arith.addf %1, %280 : vector<4x256xf32>
    %c0_180 = arith.constant 0 : index
    %c0_181 = arith.constant 0 : index
    %c0_182 = arith.constant 0 : index
    %282 = vector.load %arg4[%c0_180, %c0_181, %c0_182] : memref<1x4x256xf32, #tpu.memory_space<vmem>>, vector<1x4x256xf32>
    %283 = vector.shape_cast %282 : vector<1x4x256xf32> to vector<4x256xf32>
    %284 = vector.shape_cast %281 : vector<4x256xf32> to vector<1x4x256xf32>
    tpu.vector_store %arg4[%c0_180, %c0_181, %c0_182], %284 {strides = array<i32>} : memref<1x4x256xf32, #tpu.memory_space<vmem>>, vector<1x4x256xf32>,
    return
  }
  func.func @transform_0(%arg0: i32) -> (i32, i32, i32) {
    %c0_i32 = arith.constant 0 : i32
    %c0_i32_0 = arith.constant 0 : i32
    %c0_i32_1 = arith.constant 0 : i32
    return %arg0, %c0_i32, %c0_i32_0 : i32, i32, i32
  }
  func.func @transform_1(%arg0: i32) -> (i32, i32, i32) {
    %c0_i32 = arith.constant 0 : i32
    %c0_i32_0 = arith.constant 0 : i32
    %c0_i32_1 = arith.constant 0 : i32
    %c0_i32_2 = arith.constant 0 : i32
    return %c0_i32, %c0_i32_0, %c0_i32_1 : i32, i32, i32
  }
  func.func @transform_2(%arg0: i32) -> (i32, i32, i32) {
    %c0_i32 = arith.constant 0 : i32
    %c0_i32_0 = arith.constant 0 : i32
    %c0_i32_1 = arith.constant 0 : i32
    %c0_i32_2 = arith.constant 0 : i32
    return %c0_i32, %c0_i32_0, %c0_i32_1 : i32, i32, i32
  }
  func.func @transform_3(%arg0: i32) -> (i32, i32, i32) {
    %c0_i32 = arith.constant 0 : i32
    %c0_i32_0 = arith.constant 0 : i32
    %c0_i32_1 = arith.constant 0 : i32
    return %arg0, %c0_i32, %c0_i32_0 : i32, i32, i32
  }
}

</mosaic_0001>

<bundles_post_ra>
// kernel: tpu_custom_call.1
= control target key start
LH: loop header
LB: loop body
LE: loop exit
PB: predicated region body
PF: predicated region fallthrough
CT: control target
= control target key end

     0   :  { %8 = vsyncpa [#allocation4], 0  ;;  %s1674_s0 = inlined_call_operand.vmem [shape: f32[2,4,256], index: 0, kind: input, shape index: {}]   ;;  %s1675_s1 = inlined_call_operand.hbm [shape: f32[4,4,36], index: 1, kind: input, shape index: {}]   ;;  %s1676_s2 = inlined_call_operand.vmem [shape: f32[4,4,1], index: 2, kind: input, shape index: {}]   ;;  %s1677_s3 = inlined_call_operand.hbm [shape: f32[2,4,256], index: 3, kind: output, shape index: {}]  }
   0x1   :  { %9 = vsyncpa [#allocation5], 0 }
   0x2   :  { %11 = vsyncpa [#allocation5 + $0x1], 0  ;;  %s1350_s12 = smov 0   ;;  %s1352_s13 = smov 0  }
   0x3   :  { %s1354_s14 = smov 0   ;;  %s1356_s15 = smov 0  }
   0x4 LB: > { %s1371_s16 = sadd.s32 4294967295, %s1297_s15   ;;  %s1083_s17 = sadd.s32 4294967294, %s1297_s15   ;;  %s1297_s15 = sphi %s1356_s15, %s1685_s15   ;;  %s1293_s14 = sphi %s1354_s14, %s1684_s14   ;;  %s1289_s13 = sphi %s1352_s13, %s1683_s13   ;;  %s1285_s12 = sphi %s1350_s12, %s1682_s12  }
   0x5   : > { %s1375_s18 = sadd.s32 1, %s1297_s15   ;;  %s92_s19 = sadd.s32 1, %s1293_s14 }
   0x6   : > { %s89_s20 = ssub.s32 %s1297_s15, %s1375_s18  ;;  %p102_p0 = scmp.ne.s32.totalorder %s1293_s14, %s1289_s13 }
   0x7   : > { %p90_p1 = scmp.eq.s32.totalorder %s89_s20, 0  ;;  %p103_p2 = scmp.eq.s32.totalorder %s1371_s16, 1 }
   0x8   : > { %p108_p3 = scmp.ne.s32.totalorder %s1289_s13, %s1285_s12  ;;  %p109_p4 = scmp.eq.s32.totalorder %s1083_s17, 1 }
   0x9   : > { %s1386_s21 = scalar_select %p90_p1, %s1293_s14, %s92_s19  }
   0xa   : > { %p1388_p5 = por %p103_p2, %p102_p0  ;;  %p1392_p6 = por %p109_p4, %p108_p3 }
   0xb   : > { %p1084_p7 = scmp.ge.s32.totalorder %s1297_s15, 1  ;;  %p116_p8 = scmp.lt.s32.totalorder %s1297_s15, 3 }
   0xc   : > { %p1132_p9 = scmp.eq.s32.totalorder %s1371_s16, 0  ;;  %s127_s26 = sshll.u32 %s1675_s1, 4  ;;  %s128_s26 = int_to_ptr.hbm [resolvable:$true] %s127_s26 }
   0xd   : > { %p117_p10 = pnand %p1084_p7, %p116_p8  ;;  %s1299_s27 = smov [#allocation3]  }
   0xe   : > { %s129_s28 = sshll.u32 %s1299_s27, 4  ;;  %s1300_s29 = smov 64   ;;  %s130_s28 = int_to_ptr.vmem [resolvable:$true] %s129_s28 }
   0xf   : > { %p1124_p11 = pneg %p117_p10  ;;  %s1301_s30 = smov 4  }
  0x10   : > { %156 = sbr.rel (%p117_p10) target bundleno = 1243 (0x4db), region = 32 }
  0x11   : > { %p1125_p12 = pnand %p1132_p9, %p1124_p11 }
  0x13   : > { %1127 = dma.hbm_to_vmem [thread:$0]  (!%p1125_p12), %s128_s26, 256, %s130_s28, [#allocation4], %s1300_s29, %s1300_s29, %s1301_s30  }
  0x15   : > { %1276 = dma.done.wait (%p1132_p9), [#allocation4], 256  }
  0x16   : > { %1278 = vsyncadd (%p1132_p9), [#allocation4], 4294967040  ;;  %p181_p13 = scmp.lt.s32.totalorder %s1371_s16, 1  ;;  %s1302_s9 = smov 16   ;;  %v187_v20 = vlaneseq  ;;  %v379_v55 = vld [vmem:[%s1676_s2] sm:$0xf] }
  0x17   : > { %s1303_s10 = smov 15   ;;  %s1304_s11 = smov 1   ;;  %v1310_v58 = vmov 0  }
  0x18   : > { %s182_s4 = scalar_select %p181_p13, %s1371_s16, 1  ;;  %v1426_v21 = vand.u32 127, %v187_v20  ;;  %1198 = vset.pattern.permute.xlu1 %v1310_v58  ;;  %1199 = vset.pattern.permute.xlu0 %v1310_v58 }
  0x19   : > { %s1305_s17 = smov 127   ;;  %s1306_s19 = smov 113   ;;  %1200 = vset.pattern.permute.xlu2 %v1310_v58 }
  0x1a   : > { %s1116_s5 = sshll.u32 %s182_s4, 3  ;;  %s1307_s20 = smov 112   ;;  %vm224_vm0 = vcmp.lt.s32.totalorder %v1426_v21, 16  ;;  %vm205_vm1 = vcmp.ge.s32.totalorder %v1426_v21, 16  ;;  %v1433_v29 = vadd.s32 128, %v1426_v21  ;;  %v1438_v32 = vand.u32 15, %v1426_v21 }
  0x1b   : > { %s185_s8 = scalar_lea.vmem %s1674_s0, %s1116_s5  ;;  %s1308_s24 = smov 17   ;;  %vm266_vm2 = vcmp.lt.s32.totalorder %v1426_v21, 1  ;;  %vm295_vm7 = vcmp.lt.s32.totalorder %v1426_v21, 127  ;;  %vm317_vm9 = vcmp.lt.s32.totalorder %v1426_v21, 113  ;;  %vm337_vm11 = vcmp.lt.s32.totalorder %v1426_v21, 112 }
  0x1c   : > { %v1413_v0 = vld [vmem:[%s185_s8] sm:$0xff]  ;;  %s1309_s25 = smov 111   ;;  %v1441_v33 = vand.u32 15, %v1433_v29  ;;  %vm207_vm3 = vcmp.ge.s32.totalorder %v1438_v32, 1  ;;  %vm249_vm5 = vcmp.lt.s32.totalorder %v1438_v32, 15  ;;  %vm321_vm8 = vcmp.lt.s32.totalorder %v1433_v29, 240 }
  0x1d   : > { %193 = vst [vmem:[#allocation1] ss:$2 sm:$0xff] %v1413_v0  ;;  %vm202_vm12 = vcmp.lt.s32.totalorder %v1426_v21, 17  ;;  %vm359_vm13 = vcmp.lt.s32.totalorder %v1426_v21, 111  ;;  %vm209_vm14 = vmand %vm205_vm1, %vm207_vm3  ;;  %s1311_s28 = smov 94   ;;  %s1312_s29 = smov 96  }
  0x1e   : > { %vm208_vm4 = vcmp.ge.s32.totalorder %v1441_v33, 1  ;;  %vm250_vm6 = vcmp.lt.s32.totalorder %v1441_v33, 15  ;;  %s1313_s30 = smov 126   ;;  %s1314_s4 = smov 2  }
  0x1f   : > { %vm323_vm10 = vmand %vm321_vm8, %vm208_vm4  ;;  %s1315_s5 = smov 98   ;;  %s1316_s6 = smov 32  }
  0x20   : > { %vm363_vm15 = vmand %vm321_vm8, %vm250_vm6  ;;  %s1317_s7 = smov 34   ;;  %s1318_s8 = smov 30  }
  0x21   : > { %s1325_s26 = smov 5  }
  0x24   : > { %v194_v1 = vld.sshfl [vmem:[#allocation1] sm:$0xff pattern:$0x75316420]  ;;  %v195_v2 = vld.sshfl [vmem:[#allocation1 + $0x8] sm:$0xff pattern:$0x75316420] }
  0x25   : > { %215 = vst [vmem:[#allocation1] ss:$2 sm:$0xff] %v1413_v0 }
  0x2c   : > { %v216_v3 = vld.sshfl [vmem:[#allocation1] sm:$0xff pattern:$0x75316420]  ;;  %v217_v4 = vld.sshfl [vmem:[#allocation1 + $0x8] sm:$0xff pattern:$0x75316420] }
  0x2d   : > { %237 = vst [vmem:[#allocation1] ss:$2 sm:$0xff] %v1413_v0  ;;  %220 = vrot.lane.b32.xlu1 %v216_v3, %s1302_s9  ;;  %222 = vrot.lane.b32.xlu2 %v217_v4, %s1302_s9  ;;  %s1117_s9 = sshll.u32 %s1371_s16, 3 }
  0x34   : > { %v238_v5 = vld.sshfl [vmem:[#allocation1] sm:$0xff pattern:$0x75316420]  ;;  %v239_v6 = vld.sshfl [vmem:[#allocation1 + $0x8] sm:$0xff pattern:$0x75316420] }
  0x35   : > { %242 = vrot.lane.b32.xlu0 %v238_v5, %s1303_s10  ;;  %257 = vst [vmem:[#allocation1] ss:$2 sm:$0xff] %v1413_v0 }
  0x3c   : > { %v258_v7 = vld.sshfl [vmem:[#allocation1] sm:$0xff pattern:$0x75316420]  ;;  %v259_v8 = vld.sshfl [vmem:[#allocation1 + $0x8] sm:$0xff pattern:$0x75316420] }
  0x3d   : > { %264 = vrot.lane.b32.xlu0 %v259_v8, %s1304_s11  ;;  %279 = vst [vmem:[#allocation1] ss:$2 sm:$0xff] %v1413_v0  ;;  %262 = vrot.lane.b32.xlu2 %v258_v7, %s1304_s11  ;;  %s1319_s11 = smov 123  }
  0x44   : > { %v280_v9 = vld.sshfl [vmem:[#allocation1] sm:$0xff pattern:$0x75316420]  ;;  %v281_v10 = vld.sshfl [vmem:[#allocation1 + $0x8] sm:$0xff pattern:$0x75316420] }
  0x45   : > { %286 = vst [vmem:[#allocation1] ss:$2 sm:$0xff] %v1413_v0 }
  0x46   : > { %284 = vst [vmem:[#allocation2 + $0x48] sm:$0xf] %v280_v9 }
  0x47   : > { %285 = vst [vmem:[#allocation2 + $0x28] sm:$0xf] %v281_v10 }
  0x4c   : > { %v287_v11 = vld.sshfl [vmem:[#allocation1] sm:$0xff pattern:$0x75316420]  ;;  %v288_v12 = vld.sshfl [vmem:[#allocation1 + $0x8] sm:$0xff pattern:$0x75316420] }
  0x4d   : > { %308 = vst [vmem:[#allocation1] ss:$2 sm:$0xff] %v1413_v0  ;;  %291 = vrot.lane.b32.xlu2 %v287_v11, %s1305_s17 }
  0x54   : > { %v309_v13 = vld.sshfl [vmem:[#allocation1] sm:$0xff pattern:$0x75316420]  ;;  %v310_v14 = vld.sshfl [vmem:[#allocation1 + $0x8] sm:$0xff pattern:$0x75316420] }
  0x55   : > { %313 = vrot.lane.b32.xlu0 %v309_v13, %s1306_s19  ;;  %315 = vrot.lane.b32.xlu1 %v310_v14, %s1306_s19  ;;  %328 = vst [vmem:[#allocation1] ss:$2 sm:$0xff] %v1413_v0  ;;  %s1321_s19 = smov 53  }
  0x56   : > { %293 = vrot.lane.b32.xlu2 %v288_v12, %s1305_s17  ;;  %s1320_s17 = smov 48  }
  0x5c   : > { %v329_v15 = vld.sshfl [vmem:[#allocation1] sm:$0xff pattern:$0x75316420]  ;;  %v330_v16 = vld.sshfl [vmem:[#allocation1 + $0x8] sm:$0xff pattern:$0x75316420] }
  0x5d   : > { %333 = vrot.lane.b32.xlu0 %v329_v15, %s1307_s20  ;;  %350 = vst [vmem:[#allocation1] ss:$2 sm:$0xff] %v1413_v0 }
  0x5e   : > { %198 = vrot.lane.b32.xlu2 %v194_v1, %s1308_s24 }
  0x64   : > { %v351_v17 = vld.sshfl [vmem:[#allocation1] sm:$0xff pattern:$0x75316420]  ;;  %v352_v18 = vld.sshfl [vmem:[#allocation1 + $0x8] sm:$0xff pattern:$0x75316420] }
  0x65   : > { %335 = vrot.lane.b32.xlu0 %v330_v16, %s1307_s20  ;;  %355 = vrot.lane.b32.xlu1 %v351_v17, %s1309_s25  ;;  %s1322_s20 = smov 43  }
  0x6d   : > { %200 = vrot.lane.b32.xlu0 %v195_v2, %s1308_s24  ;;  %357 = vrot.lane.b32.xlu1 %v352_v18, %s1309_s25  ;;  %s1323_s24 = smov 80   ;;  %s1324_s25 = smov 75  }
  0x75   : > { %244 = vrot.lane.b32.xlu1 %v239_v6, %s1303_s10 }
  0x7d   : > { %382 = vperm.xlu1 %1198, %v379_v55  }
  0x87   : > { %v223_v19 = vpop.permute.xlu2 %222 }
  0x97   : > { %v263_v22 = vpop.permute.xlu2 %262 }
  0x9f   : > { %v221_v23 = vpop.permute.xlu1 %220 }
  0xa0   : > { %v225_v24 = vsel %vm224_vm0, %v221_v23, %v223_v19  ;;  %v226_v25 = vsel %vm224_vm0, %v223_v19, %v221_v23  ;;  %vm246_vm0 = vcmp.lt.s32.totalorder %v1426_v21, 15 }
  0xa1   : > { %v227_v26 = vsel %vm205_vm1, %v226_v25, 0.0  ;;  %v232_v27 = vrot.slane %v225_v24, 4 }
  0xa2   : > { %v231_v28 = vrot.slane %v227_v26, 4  ;;  %v368_v26 = vld [vmem:[#allocation3] sm:$0xf] }
  0xa3   : > { %236 = vst [vmem:[#allocation2] sm:$0xf0] %v232_v27 }
  0xa4   : > { %235 = vst [vmem:[#allocation2 + $0x30] sm:$0xf0] %v231_v28 }
  0xa7   : > { %v1435_v30 = vpop.permute.xlu0 %242  ;;  %v292_v31 = vpop.permute.xlu2 %291 }
  0xaf   : > { %v265_v34 = vpop.permute.xlu0 %264 }
  0xb0   : > { %v267_v35 = vsel %vm266_vm2, %v263_v22, %v265_v34  ;;  %v268_v36 = vsel %vm266_vm2, %v265_v34, %v263_v22  ;;  %v294_v37 = vpop.permute.xlu2 %293  ;;  %vm251_vm2 = vmand %vm205_vm1, %vm249_vm5  ;;  %vm385_vm1 = vcmask 293888  }
  0xb1   : > { %v269_v38 = vsel %vm207_vm3, %v268_v36, 0.0  ;;  %v270_v39 = vsel %vm208_vm4, %v267_v35, 0.0  ;;  %v296_v40 = vsel %vm295_vm7, %v292_v31, %v294_v37  ;;  %v297_v41 = vsel %vm295_vm7, %v294_v37, %v292_v31 }
  0xb2   : > { %v273_v42 = vrot.slane %v269_v38, 4  ;;  %v274_v43 = vrot.slane %v270_v39, 4  ;;  %v298_v44 = vsel %vm249_vm5, %v296_v40, 0.0  ;;  %v299_v45 = vsel %vm250_vm6, %v297_v41, 0.0 }
  0xb3   : > { %v302_v46 = vrot.slane %v298_v44, 4  ;;  %v303_v47 = vrot.slane %v299_v45, 4  ;;  %vm540_vm7 = vcmp.lt.s32.totalorder %v1426_v21, 96 }
  0xb4   : > { %277 = vst [vmem:[#allocation2 + $0x18] sm:$0xf0] %v273_v42 }
  0xb5   : > { %278 = vst [vmem:[#allocation2 + $0x10] sm:$0xf0] %v274_v43 }
  0xb6   : > { %306 = vst [vmem:[#allocation2 + $0x48] sm:$0xf0] %v302_v46 }
  0xb7   : > { %307 = vst [vmem:[#allocation2 + $0x28] sm:$0xf0] %v303_v47 }
  0xb8   : > { %v199_v1 = vpop.permute.xlu2 %198 }
  0xbd   : > { %v373_v22 = vld [vmem:[#allocation2 + $0x48] sm:$0xff] }
  0xbe   : > { %v374_v23 = vld [vmem:[#allocation2 + $0x28] sm:$0xff] }
  0xc7   : > { %v314_v48 = vpop.permute.xlu0 %313  ;;  %v316_v49 = vpop.permute.xlu1 %315 }
  0xc8   : > { %v318_v50 = vsel %vm317_vm9, %v314_v48, %v316_v49  ;;  %v319_v51 = vsel %vm317_vm9, %v316_v49, %v314_v48 }
  0xc9   : > { %v324_v52 = vsel %vm207_vm3, %v318_v50, 0.0  ;;  %v325_v53 = vsel %vm323_vm10, %v319_v51, 0.0  ;;  %vm389_vm3 = vcmask 1043456   ;;  %vm508_vm10 = vcmp.lt.s32.totalorder %v1426_v21, 126 }
  0xca   : > { %326 = vst [vmem:[#allocation2 + $0x8] sm:$0xf] %v324_v52 }
  0xcb   : > { %327 = vst [vmem:[#allocation2 + $0x20] sm:$0xf] %v325_v53 }
  0xcf   : > { %v334_v54 = vpop.permute.xlu0 %333 }
  0xd7   : > { %v336_v56 = vpop.permute.xlu0 %335  ;;  %v356_v57 = vpop.permute.xlu1 %355 }
  0xd8   : > { %v338_v59 = vsel %vm337_vm11, %v334_v54, %v336_v56  ;;  %v339_v60 = vsel %vm337_vm11, %v336_v56, %v334_v54  ;;  %vm446_vm11 = vcmp.ge.s32.totalorder %v1441_v33, 2 }
  0xd9   : > { %v341_v61 = vsel %vm321_vm8, %v339_v60, 0.0  ;;  %v344_v62 = vrot.slane %v338_v59, 4  ;;  %vm477_vm8 = vcmp.lt.s32.totalorder %v1438_v32, 14 }
  0xda   : > { %v345_v63 = vrot.slane %v341_v61, 4 }
  0xdb   : > { %348 = vst [vmem:[#allocation2 + $0x8] sm:$0xf0] %v344_v62 }
  0xdc   : > { %349 = vst [vmem:[#allocation2 + $0x20] sm:$0xf0] %v345_v63 }
  0xdf   : > { %v201_v2 = vpop.permute.xlu0 %200  ;;  %v358_v3 = vpop.permute.xlu1 %357 }
  0xe0   : > { %v203_v4 = vsel %vm202_vm12, %v199_v1, %v201_v2  ;;  %v204_v5 = vsel %vm202_vm12, %v201_v2, %v199_v1  ;;  %v360_v6 = vsel %vm359_vm13, %v356_v57, %v358_v3  ;;  %v361_v7 = vsel %vm359_vm13, %v358_v3, %v356_v57  ;;  %v1096_v1 = vld [vmem:[%s1676_s2 + $0x4] sm:$0xf] }
  0xe1   : > { %v211_v8 = vsel %vm209_vm14, %v204_v5, 0.0  ;;  %v212_v9 = vsel %vm208_vm4, %v203_v4, 0.0  ;;  %v364_v10 = vsel %vm249_vm5, %v360_v6, 0.0  ;;  %v365_v11 = vsel %vm363_vm15, %v361_v7, 0.0 }
  0xe2   : > { %213 = vst [vmem:[#allocation2 + $0x30] sm:$0xf] %v211_v8  ;;  %v375_v19 = vld [vmem:[#allocation2 + $0x8] sm:$0xff]  ;;  %vm529_vm4 = vcmp.lt.s32.totalorder %v1433_v29, 224  ;;  %vm478_vm5 = vcmp.lt.s32.totalorder %v1441_v33, 14  ;;  %vm489_vm12 = vcmp.lt.s32.totalorder %v1426_v21, 2 }
  0xe3   : > { %214 = vst [vmem:[#allocation2] sm:$0xf] %v212_v9  ;;  %v376_v20 = vld [vmem:[#allocation2 + $0x20] sm:$0xff]  ;;  %vm561_vm9 = vmand %vm529_vm4, %vm478_vm5  ;;  %vm445_vm13 = vcmp.ge.s32.totalorder %v1438_v32, 2  ;;  %vm525_vm14 = vcmp.lt.s32.totalorder %v1426_v21, 98 }
  0xe4   : > { %366 = vst [vmem:[#allocation2 + $0x40] sm:$0xf] %v364_v10  ;;  %vm1526_vm15 = vmand %vm529_vm4, %vm446_vm11 }
  0xe5   : > { %367 = vst [vmem:[#allocation2 + $0x38] sm:$0xf] %v365_v11 }
  0xe7   : > { %v245_v12 = vpop.permute.xlu1 %244 }
  0xe8   : > { %v247_v13 = vsel %vm246_vm0, %v1435_v30, %v245_v12  ;;  %v248_v14 = vsel %vm246_vm0, %v245_v12, %v1435_v30  ;;  %vm457_vm0 = vcmp.lt.s32.totalorder %v1426_v21, 32 }
  0xe9   : > { %v253_v15 = vsel %vm251_vm2, %v248_v14, 0.0  ;;  %v254_v16 = vsel %vm250_vm6, %v247_v13, 0.0  ;;  %v369_v27 = vld [vmem:[#allocation2 + $0x30] sm:$0xff]  ;;  %vm557_vm6 = vcmp.lt.s32.totalorder %v1426_v21, 94  ;;  %vm443_vm2 = vcmp.ge.s32.totalorder %v1426_v21, 32 }
  0xea   : > { %255 = vst [vmem:[#allocation2 + $0x18] sm:$0xf] %v253_v15  ;;  %v370_v28 = vld [vmem:[#allocation2] sm:$0xff] }
  0xeb   : > { %256 = vst [vmem:[#allocation2 + $0x10] sm:$0xf] %v254_v16  ;;  %v377_v17 = vld [vmem:[#allocation2 + $0x40] sm:$0xf] }
  0xec   : > { %1092 = vmatpush.msk.msra.mxu0 %vm389_vm3, %v377_v17  ;;  %v378_v18 = vld [vmem:[#allocation2 + $0x38] sm:$0xf] }
  0xed   : > { %1094 = vmatpush.msk.msra.mxu1 %vm389_vm3, %v378_v18 }
  0xee   : > { %408 = vmatpush.msra.mxu0 %v375_v19 }
  0xef   : > { %428 = vmatpush.msra.mxu1 %v376_v20  ;;  %v383_v30 = vpop.permute.xlu1 %382 }
  0xf0   : > { %409 = vmatpush.msra.mxu0 %v373_v22 }
  0xf1   : > { %429 = vmatpush.msra.mxu1 %v374_v23  ;;  %v371_v24 = vld [vmem:[#allocation2 + $0x18] sm:$0xff] }
  0xf2   : > { %410 = vmatpush.msra.mxu0 %v371_v24  ;;  %v372_v25 = vld [vmem:[#allocation2 + $0x10] sm:$0xff] }
  0xf3   : > { %430 = vmatpush.msra.mxu1 %v372_v25 }
  0xf4   : > { %411 = vmatpush.msra.mxu0 %v369_v27 }
  0xf5   : > { %431 = vmatpush.msra.mxu1 %v370_v28  ;;  %1093 = vmatmul.msk.f32.vlgmr.msra.gmra.mxu0 %vm385_vm1, %v368_v26 }
  0xf6   : > { %1095 = vmatmul.msk.f32.vlgmr.msra.gmra.mxu1 %vm385_vm1, %v368_v26 }
 0x172   : > { %v413_v31 = vpop.f32.mrf.mxu0 }
 0x173   : > { %v433_v34 = vpop.f32.mrf.mxu1  ;;  %v414_v35 = vadd.f32 %v413_v31, %v383_v30 }
 0x174   : > { %v434_v36 = vadd.f32 %v433_v34, %v383_v30 }
 0x175   : > { %502 = vst [vmem:[#allocation2 + $0x48] sm:$0xf] %v414_v35  ;;  %553 = vrot.lane.b32.xlu1 %v414_v35, %s1311_s28  ;;  %536 = vrot.lane.b32.xlu2 %v414_v35, %s1312_s29 }
 0x176   : > { %503 = vst [vmem:[#allocation2 + $0x28] sm:$0xf] %v434_v36  ;;  %538 = vrot.lane.b32.xlu0 %v434_v36, %s1312_s29  ;;  %s1326_s29 = smov 85  }
 0x17d   : > { %506 = vrot.lane.b32.xlu1 %v434_v36, %s1313_s30  ;;  %555 = vrot.lane.b32.xlu2 %v434_v36, %s1311_s28 }
 0x17e   : > { %504 = vrot.lane.b32.xlu0 %v414_v35, %s1313_s30  ;;  %s1328_s30 = smov 8  }
 0x185   : > { %485 = vrot.lane.b32.xlu1 %v414_v35, %s1314_s4  ;;  %521 = vrot.lane.b32.xlu2 %v414_v35, %s1315_s5 }
 0x186   : > { %523 = vrot.lane.b32.xlu0 %v434_v36, %s1315_s5 }
 0x18d   : > { %455 = vrot.lane.b32.xlu1 %v434_v36, %s1316_s6  ;;  %487 = vrot.lane.b32.xlu2 %v434_v36, %s1314_s4  ;;  %s1329_s4 = smov 120  }
 0x18e   : > { %453 = vrot.lane.b32.xlu0 %v414_v35, %s1316_s6 }
 0x195   : > { %436 = vrot.lane.b32.xlu1 %v414_v35, %s1317_s7  ;;  %470 = vrot.lane.b32.xlu2 %v414_v35, %s1318_s8 }
 0x196   : > { %472 = vrot.lane.b32.xlu0 %v434_v36, %s1318_s8 }
 0x19d   : > { %438 = vrot.lane.b32.xlu2 %v434_v36, %s1317_s7  ;;  %s178_s7 = sand.u32 1, %s1289_s13  }
 0x19e   : > { %582 = vperm.xlu0 %1199, %v1096_v1   ;;  %s1089_s8 = sshll.u32 %s178_s7, 3  ;;  %s996_s16 = scalar_lea.sflag [#allocation5], %s178_s7 }
 0x1cf   : > { %v537_v37 = vpop.permute.xlu2 %536 }
 0x1d7   : > { %v556_v38 = vpop.permute.xlu2 %555 }
 0x1df   : > { %v522_v43 = vpop.permute.xlu2 %521 }
 0x1e7   : > { %v554_v39 = vpop.permute.xlu1 %553  ;;  %v488_v59 = vpop.permute.xlu2 %487 }
 0x1e8   : > { %v539_v40 = vpop.permute.xlu0 %538  ;;  %v558_v41 = vsel %vm557_vm6, %v554_v39, %v556_v38  ;;  %v559_v42 = vsel %vm557_vm6, %v556_v38, %v554_v39  ;;  %vm474_vm6 = vcmp.lt.s32.totalorder %v1426_v21, 30 }
 0x1e9   : > { %v541_v44 = vsel %vm540_vm7, %v537_v37, %v539_v40  ;;  %v542_v45 = vsel %vm540_vm7, %v539_v40, %v537_v37  ;;  %v562_v46 = vsel %vm477_vm8, %v558_v41, 0.0  ;;  %v563_v47 = vsel %vm561_vm9, %v559_v42, 0.0  ;;  %vm447_vm7 = vmand %vm443_vm2, %vm445_vm13  ;;  %v567_v42 = vld [vmem:[#allocation3 + $0x4] sm:$0xf] }
 0x1ea   : > { %v544_v48 = vsel %vm529_vm4, %v542_v45, 0.0  ;;  %v547_v49 = vrot.slane %v541_v44, 4  ;;  %564 = vst [vmem:[#allocation2 + $0x40] sm:$0xf] %v562_v46  ;;  %vm440_vm4 = vcmp.lt.s32.totalorder %v1426_v21, 34  ;;  %vm479_vm9 = vmand %vm443_vm2, %vm477_vm8 }
 0x1eb   : > { %v548_v50 = vrot.slane %v544_v48, 4  ;;  %565 = vst [vmem:[#allocation2 + $0x38] sm:$0xf] %v563_v47 }
 0x1ec   : > { %551 = vst [vmem:[#allocation2 + $0x8] sm:$0xf0] %v547_v49 }
 0x1ed   : > { %552 = vst [vmem:[#allocation2 + $0x20] sm:$0xf0] %v548_v50  ;;  %v1101_v50 = vld [vmem:[%s1676_s2 + $0x8] sm:$0xf] }
 0x1ef   : > { %v507_v51 = vpop.permute.xlu1 %506  ;;  %v471_v13 = vpop.permute.xlu2 %470 }
 0x1f0   : > { %v505_v52 = vpop.permute.xlu0 %504 }
 0x1f1   : > { %v509_v53 = vsel %vm508_vm10, %v505_v52, %v507_v51  ;;  %v510_v54 = vsel %vm508_vm10, %v507_v51, %v505_v52  ;;  %v576_v55 = vld [vmem:[#allocation2 + $0x40] sm:$0xf]  ;;  %vm644_vm10 = vcmp.ge.s32.totalorder %v1441_v33, 5 }
 0x1f2   : > { %v511_v56 = vsel %vm477_vm8, %v509_v53, 0.0  ;;  %v512_v57 = vsel %vm478_vm5, %v510_v54, 0.0  ;;  %1097 = vmatpush.msk.msra.mxu2 %vm389_vm3, %v576_v55  ;;  %v577_v58 = vld [vmem:[#allocation2 + $0x38] sm:$0xf]  ;;  %vm727_vm8 = vcmp.lt.s32.totalorder %v1433_v29, 176 }
 0x1f3   : > { %v515_v60 = vrot.slane %v511_v56, 4  ;;  %v516_v61 = vrot.slane %v512_v57, 4  ;;  %1099 = vmatpush.msk.msra.mxu3 %vm389_vm3, %v577_v58 }
 0x1f5   : > { %519 = vst [vmem:[#allocation2 + $0x48] sm:$0xf0] %v515_v60 }
 0x1f6   : > { %520 = vst [vmem:[#allocation2 + $0x28] sm:$0xf0] %v516_v61 }
 0x1f7   : > { %v486_v63 = vpop.permute.xlu1 %485  ;;  %v439_v26 = vpop.permute.xlu2 %438 }
 0x1f8   : > { %v524_v2 = vpop.permute.xlu0 %523  ;;  %v490_v3 = vsel %vm489_vm12, %v486_v63, %v488_v59  ;;  %v491_v4 = vsel %vm489_vm12, %v488_v59, %v486_v63  ;;  %vm723_vm12 = vcmp.lt.s32.totalorder %v1426_v21, 53 }
 0x1f9   : > { %v526_v5 = vsel %vm525_vm14, %v522_v43, %v524_v2  ;;  %v527_v6 = vsel %vm525_vm14, %v524_v2, %v522_v43  ;;  %v492_v7 = vsel %vm445_vm13, %v491_v4, 0.0  ;;  %v493_v8 = vsel %vm446_vm11, %v490_v3, 0.0 }
 0x1fa   : > { %v532_v9 = vsel %vm445_vm13, %v526_v5, 0.0  ;;  %v533_v10 = vsel %vm1526_vm15, %v527_v6, 0.0  ;;  %v496_v11 = vrot.slane %v492_v7, 4  ;;  %v497_v12 = vrot.slane %v493_v8, 4  ;;  %vm729_vm15 = vmand %vm727_vm8, %vm644_vm10 }
 0x1fb   : > { %534 = vst [vmem:[#allocation2 + $0x8] sm:$0xf] %v532_v9  ;;  %vm755_vm13 = vcmp.lt.s32.totalorder %v1426_v21, 43  ;;  %vm643_vm14 = vcmp.ge.s32.totalorder %v1438_v32, 5 }
 0x1fc   : > { %535 = vst [vmem:[#allocation2 + $0x20] sm:$0xf] %v533_v10  ;;  %v572_v24 = vld [vmem:[#allocation2 + $0x48] sm:$0xff] }
 0x1fd   : > { %500 = vst [vmem:[#allocation2 + $0x18] sm:$0xf0] %v496_v11  ;;  %v573_v25 = vld [vmem:[#allocation2 + $0x28] sm:$0xff] }
 0x1fe   : > { %501 = vst [vmem:[#allocation2 + $0x10] sm:$0xf0] %v497_v12 }
 0x1ff   : > { %v456_v14 = vpop.permute.xlu1 %455 }
 0x200   : > { %v454_v15 = vpop.permute.xlu0 %453 }
 0x201   : > { %v458_v16 = vsel %vm457_vm0, %v454_v15, %v456_v14  ;;  %v459_v17 = vsel %vm457_vm0, %v456_v14, %v454_v15  ;;  %vm675_vm0 = vcmp.lt.s32.totalorder %v1438_v32, 11 }
 0x202   : > { %v460_v18 = vsel %vm443_vm2, %v459_v17, 0.0  ;;  %v465_v19 = vrot.slane %v458_v16, 4  ;;  %v574_v20 = vld [vmem:[#allocation2 + $0x8] sm:$0xff] }
 0x203   : > { %v464_v22 = vrot.slane %v460_v18, 4  ;;  %606 = vmatpush.msra.mxu2 %v574_v20  ;;  %v575_v23 = vld [vmem:[#allocation2 + $0x20] sm:$0xff]  ;;  %v1327_v18 = vmov 0.0  }
 0x204   : > { %469 = vst [vmem:[#allocation2] sm:$0xf0] %v465_v19  ;;  %626 = vmatpush.msra.mxu3 %v575_v23  ;;  %v1592_v19 = vrot.slane %v1327_v18, 4 }
 0x205   : > { %468 = vst [vmem:[#allocation2 + $0x30] sm:$0xf0] %v464_v22  ;;  %607 = vmatpush.msra.mxu2 %v572_v24 }
 0x206   : > { %627 = vmatpush.msra.mxu3 %v573_v25 }
 0x207   : > { %v437_v27 = vpop.permute.xlu1 %436 }
 0x208   : > { %v473_v28 = vpop.permute.xlu0 %472  ;;  %v441_v30 = vsel %vm440_vm4, %v437_v27, %v439_v26  ;;  %v442_v31 = vsel %vm440_vm4, %v439_v26, %v437_v27  ;;  %vm706_vm4 = vcmp.lt.s32.totalorder %v1426_v21, 123 }
 0x209   : > { %v475_v34 = vsel %vm474_vm6, %v471_v13, %v473_v28  ;;  %v476_v35 = vsel %vm474_vm6, %v473_v28, %v471_v13  ;;  %v449_v36 = vsel %vm447_vm7, %v442_v31, 0.0  ;;  %v450_v39 = vsel %vm446_vm11, %v441_v30, 0.0 }
 0x20a   : > { %v481_v37 = vsel %vm479_vm9, %v476_v35, 0.0  ;;  %v482_v38 = vsel %vm478_vm5, %v475_v34, 0.0  ;;  %451 = vst [vmem:[#allocation2 + $0x30] sm:$0xf] %v449_v36  ;;  %vm738_vm5 = vcmp.lt.s32.totalorder %v1426_v21, 48  ;;  %vm676_vm11 = vcmp.lt.s32.totalorder %v1441_v33, 11 }
 0x20b   : > { %483 = vst [vmem:[#allocation2 + $0x18] sm:$0xf] %v481_v37  ;;  %vm759_vm2 = vmand %vm727_vm8, %vm676_vm11  ;;  %vm641_vm6 = vcmp.ge.s32.totalorder %v1426_v21, 80  ;;  %vm672_vm7 = vcmp.lt.s32.totalorder %v1426_v21, 75  ;;  %vm687_vm9 = vcmp.lt.s32.totalorder %v1426_v21, 5 }
 0x20c   : > { %484 = vst [vmem:[#allocation2 + $0x10] sm:$0xf] %v482_v38 }
 0x20d   : > { %452 = vst [vmem:[#allocation2] sm:$0xf] %v450_v39 }
 0x210   : > { %v583_v45 = vpop.permute.xlu0 %582 }
 0x211   : > { %v568_v43 = vld [vmem:[#allocation2 + $0x30] sm:$0xff] }
 0x212   : > { %v570_v40 = vld [vmem:[#allocation2 + $0x18] sm:$0xff] }
 0x213   : > { %608 = vmatpush.msra.mxu2 %v570_v40  ;;  %v571_v41 = vld [vmem:[#allocation2 + $0x10] sm:$0xff] }
 0x214   : > { %628 = vmatpush.msra.mxu3 %v571_v41  ;;  %v569_v44 = vld [vmem:[#allocation2] sm:$0xff] }
 0x215   : > { %609 = vmatpush.msra.mxu2 %v568_v43 }
 0x216   : > { %629 = vmatpush.msra.mxu3 %v569_v44  ;;  %1098 = vmatmul.msk.f32.vlgmr.msra.gmra.mxu2 %vm385_vm1, %v567_v42 }
 0x217   : > { %1100 = vmatmul.msk.f32.vlgmr.msra.gmra.mxu3 %vm385_vm1, %v567_v42 }
 0x299   : > { %v611_v46 = vpop.f32.mrf.mxu2 }
 0x29a   : > { %v612_v47 = vadd.f32 %v611_v46, %v583_v45  ;;  %v631_v48 = vpop.f32.mrf.mxu3 }
 0x29b   : > { %v632_v49 = vadd.f32 %v631_v48, %v583_v45 }
 0x29c   : > { %700 = vst [vmem:[#allocation2 + $0x48] sm:$0xf] %v612_v47  ;;  %702 = vrot.lane.b32.xlu0 %v612_v47, %s1319_s11  ;;  %734 = vrot.lane.b32.xlu1 %v612_v47, %s1320_s17 }
 0x29d   : > { %701 = vst [vmem:[#allocation2 + $0x28] sm:$0xf] %v632_v49  ;;  %736 = vrot.lane.b32.xlu2 %v632_v49, %s1320_s17  ;;  %s1007_s17 = scalar_lea.hbm %s1677_s3, %s1117_s9 }
 0x2a4   : > { %721 = vrot.lane.b32.xlu0 %v632_v49, %s1321_s19  ;;  %751 = vrot.lane.b32.xlu1 %v612_v47, %s1322_s20 }
 0x2a5   : > { %753 = vrot.lane.b32.xlu2 %v632_v49, %s1322_s20 }
 0x2ac   : > { %651 = vrot.lane.b32.xlu0 %v612_v47, %s1323_s24  ;;  %704 = vrot.lane.b32.xlu1 %v632_v49, %s1319_s11 }
 0x2ad   : > { %719 = vrot.lane.b32.xlu2 %v612_v47, %s1321_s19  ;;  %s180_s19 = scalar_lea.vmem [#allocation6], %s1089_s8 }
 0x2ae   : > { %s1009_s20 = sshll.u32 %s180_s19, 4  ;;  %s1010_s20 = int_to_ptr.vmem [resolvable:$true] %s1009_s20 }
 0x2b4   : > { %670 = vrot.lane.b32.xlu0 %v632_v49, %s1324_s25  ;;  %683 = vrot.lane.b32.xlu1 %v612_v47, %s1325_s26 }
 0x2b5   : > { %685 = vrot.lane.b32.xlu2 %v632_v49, %s1325_s26 }
 0x2bc   : > { %780 = vperm.xlu0 %1199, %v1101_v50   ;;  %653 = vrot.lane.b32.xlu1 %v632_v49, %s1323_s24  ;;  %s1011_s24 = sshll.u32 %s1007_s17, 4  ;;  %s1012_s24 = int_to_ptr.hbm [resolvable:$true] %s1011_s24 }
 0x2bd   : > { %668 = vrot.lane.b32.xlu2 %v612_v47, %s1324_s25  ;;  %s1245_s25 = sshra.s32 %s1012_s24, 4  ;;  %s1246_s25 = int_to_ptr.hbm [resolvable:$true] %s1245_s25 }
 0x2be   : > { %s1247_s26 = scalar_lea.hbm %s1246_s25, 8  ;;  %p1252_p3 = scmp.lt.s32.totalorder %s1246_s25, %s1677_s3 }
 0x2bf   : > { %p1248_p0 = scmp.ne.s32.totalorder %s1246_s25, %s1247_s26 }
 0x2c1   : > { %p1249_p1 = pnand %p1248_p0, %p1388_p5 }
 0x2c3   : > { %p1250_p2 = pneg %p1249_p1 }
 0x2c4   : > { %634 = vrot.lane.b32.xlu1 %v612_v47, %s1326_s29 }
 0x2c5   : > { %636 = vrot.lane.b32.xlu2 %v632_v49, %s1326_s29  ;;  %s1251_s29 = scalar_lea.hbm %s1677_s3, 16 }
 0x2c6   : > { %p1253_p4 = scmp.lt.s32.totalorder %s1251_s29, %s1247_s26 }
 0x2c8   : > { %p1254_p7 = por %p1253_p4, %p1252_p3 }
 0x2ca   : > { %p1255_p8 = pnand %p1254_p7, %p1250_p2 }
 0x2f7   : > { %v737_v51 = vpop.permute.xlu2 %736 }
 0x2ff   : > { %v754_v52 = vpop.permute.xlu2 %753 }
 0x307   : > { %v720_v59 = vpop.permute.xlu2 %719 }
 0x30e   : > { %v703_v53 = vpop.permute.xlu0 %702  ;;  %v735_v54 = vpop.permute.xlu1 %734 }
 0x30f   : > { %v739_v55 = vsel %vm738_vm5, %v735_v54, %v737_v51  ;;  %v740_v56 = vsel %vm738_vm5, %v737_v51, %v735_v54  ;;  %v686_v8 = vpop.permute.xlu2 %685  ;;  %vm677_vm5 = vmand %vm641_vm6, %vm675_vm0 }
 0x310   : > { %v742_v57 = vsel %vm727_vm8, %v740_v56, 0.0  ;;  %v745_v58 = vrot.slane %v739_v55, 4  ;;  %vm655_vm8 = vcmp.lt.s32.totalorder %v1426_v21, 80  ;;  %v765_v55 = vld [vmem:[#allocation3 + $0x8] sm:$0xf] }
 0x311   : > { %v746_v60 = vrot.slane %v742_v57, 4 }
 0x312   : > { %749 = vst [vmem:[#allocation2 + $0x8] sm:$0xf0] %v745_v58 }
 0x313   : > { %750 = vst [vmem:[#allocation2 + $0x20] sm:$0xf0] %v746_v60 }
 0x316   : > { %v722_v61 = vpop.permute.xlu0 %721  ;;  %v752_v62 = vpop.permute.xlu1 %751 }
 0x317   : > { %v724_v63 = vsel %vm723_vm12, %v720_v59, %v722_v61  ;;  %v725_v1 = vsel %vm723_vm12, %v722_v61, %v720_v59  ;;  %v756_v2 = vsel %vm755_vm13, %v752_v62, %v754_v52  ;;  %v757_v3 = vsel %vm755_vm13, %v754_v52, %v752_v62  ;;  %v669_v23 = vpop.permute.xlu2 %668  ;;  %vm645_vm12 = vmand %vm641_vm6, %vm643_vm14 }
 0x318   : > { %v730_v4 = vsel %vm643_vm14, %v724_v63, 0.0  ;;  %v731_v5 = vsel %vm729_vm15, %v725_v1, 0.0  ;;  %v760_v6 = vsel %vm675_vm0, %v756_v2, 0.0  ;;  %v761_v7 = vsel %vm759_vm2, %v757_v3, 0.0 }
 0x319   : > { %732 = vst [vmem:[#allocation2 + $0x8] sm:$0xf] %v730_v4  ;;  %v1106_v4 = vld [vmem:[%s1676_s2 + $0xc] sm:$0xf]  ;;  %vm866_vm13 = vcmp.lt.s32.totalorder %v1438_v32, 8  ;;  %vm836_vm15 = vcmp.lt.s32.totalorder %v1426_v21, 8 }
 0x31a   : > { %733 = vst [vmem:[#allocation2 + $0x20] sm:$0xf] %v731_v5  ;;  %vm842_vm2 = vcmp.ge.s32.totalorder %v1441_v33, 8 }
 0x31b   : > { %762 = vst [vmem:[#allocation2 + $0x40] sm:$0xf] %v760_v6 }
 0x31c   : > { %763 = vst [vmem:[#allocation2 + $0x38] sm:$0xf] %v761_v7 }
 0x31e   : > { %v652_v29 = vpop.permute.xlu0 %651  ;;  %v705_v9 = vpop.permute.xlu1 %704 }
 0x31f   : > { %v707_v10 = vsel %vm706_vm4, %v703_v53, %v705_v9  ;;  %v708_v11 = vsel %vm706_vm4, %v705_v9, %v703_v53  ;;  %v637_v49 = vpop.permute.xlu2 %636 }
 0x320   : > { %v709_v12 = vsel %vm675_vm0, %v707_v10, 0.0  ;;  %v710_v13 = vsel %vm676_vm11, %v708_v11, 0.0  ;;  %v772_v22 = vld [vmem:[#allocation2 + $0x8] sm:$0xff]  ;;  %vm841_vm0 = vcmp.ge.s32.totalorder %v1438_v32, 8 }
 0x321   : > { %v713_v14 = vrot.slane %v709_v12, 4  ;;  %v714_v15 = vrot.slane %v710_v13, 4  ;;  %v773_v16 = vld [vmem:[#allocation2 + $0x20] sm:$0xff] }
 0x322   : > { %v774_v17 = vld [vmem:[#allocation2 + $0x40] sm:$0xf]  ;;  %903 = vst [vmem:[#allocation2 + $0x20] sm:$0xf] %v1327_v18 }
 0x323   : > { %717 = vst [vmem:[#allocation2 + $0x48] sm:$0xf0] %v713_v14  ;;  %1102 = vmatpush.msk.msrb.mxu0 %vm389_vm3, %v774_v17  ;;  %v775_v20 = vld [vmem:[#allocation2 + $0x38] sm:$0xf] }
 0x324   : > { %718 = vst [vmem:[#allocation2 + $0x28] sm:$0xf0] %v714_v15  ;;  %1104 = vmatpush.msk.msrb.mxu1 %vm389_vm3, %v775_v20 }
 0x325   : > { %919 = vst [vmem:[#allocation2 + $0x38] sm:$0xf] %v1327_v18  ;;  %804 = vmatpush.msrb.mxu0 %v772_v22 }
 0x326   : > { %824 = vmatpush.msrb.mxu1 %v773_v16  ;;  %913 = vst [vmem:[#allocation2 + $0x20] sm:$0xf0] %v1592_v19  ;;  %v671_v24 = vpop.permute.xlu0 %670  ;;  %v684_v25 = vpop.permute.xlu1 %683 }
 0x327   : > { %v673_v26 = vsel %vm672_vm7, %v669_v23, %v671_v24  ;;  %v674_v27 = vsel %vm672_vm7, %v671_v24, %v669_v23  ;;  %v688_v28 = vsel %vm687_vm9, %v684_v25, %v686_v8  ;;  %v689_v30 = vsel %vm687_vm9, %v686_v8, %v684_v25 }
 0x328   : > { %v679_v31 = vsel %vm677_vm5, %v674_v27, 0.0  ;;  %v680_v34 = vsel %vm676_vm11, %v673_v26, 0.0  ;;  %v690_v35 = vsel %vm643_vm14, %v689_v30, 0.0  ;;  %v691_v36 = vsel %vm644_vm10, %v688_v28, 0.0  ;;  %v921_v27 = vld [vmem:[#allocation3 + $0xc] sm:$0xf] }
 0x329   : > { %681 = vst [vmem:[#allocation2 + $0x18] sm:$0xf] %v679_v31  ;;  %v694_v37 = vrot.slane %v690_v35, 4  ;;  %v695_v38 = vrot.slane %v691_v36, 4  ;;  %vm638_vm11 = vcmp.lt.s32.totalorder %v1426_v21, 85  ;;  %vm867_vm14 = vcmp.lt.s32.totalorder %v1441_v33, 8 }
 0x32a   : > { %682 = vst [vmem:[#allocation2 + $0x10] sm:$0xf] %v680_v34  ;;  %v770_v39 = vld [vmem:[#allocation2 + $0x48] sm:$0xff] }
 0x32b   : > { %698 = vst [vmem:[#allocation2 + $0x18] sm:$0xf0] %v694_v37  ;;  %805 = vmatpush.msrb.mxu0 %v770_v39  ;;  %v771_v40 = vld [vmem:[#allocation2 + $0x28] sm:$0xff] }
 0x32c   : > { %699 = vst [vmem:[#allocation2 + $0x10] sm:$0xf0] %v695_v38  ;;  %825 = vmatpush.msrb.mxu1 %v771_v40  ;;  %v931_v2 = vld [vmem:[#allocation2 + $0x38] sm:$0xf] }
 0x32d   : > { %1109 = vmatpush.msk.msrb.mxu3 %vm389_vm3, %v931_v2  ;;  %v929_v3 = vld [vmem:[#allocation2 + $0x20] sm:$0xff] }
 0x32e   : > { %v654_v41 = vpop.permute.xlu1 %653  ;;  %v781_v58 = vpop.permute.xlu0 %780 }
 0x32f   : > { %v656_v42 = vsel %vm655_vm8, %v652_v29, %v654_v41  ;;  %v657_v43 = vsel %vm655_vm8, %v654_v41, %v652_v29  ;;  %980 = vmatpush.msrb.mxu3 %v929_v3 }
 0x330   : > { %v658_v44 = vsel %vm641_vm6, %v657_v43, 0.0  ;;  %v663_v45 = vrot.slane %v656_v42, 4 }
 0x331   : > { %v662_v46 = vrot.slane %v658_v44, 4 }
 0x332   : > { %667 = vst [vmem:[#allocation2] sm:$0xf0] %v663_v45  ;;  %v768_v47 = vld [vmem:[#allocation2 + $0x18] sm:$0xff] }
 0x333   : > { %666 = vst [vmem:[#allocation2 + $0x30] sm:$0xf0] %v662_v46  ;;  %806 = vmatpush.msrb.mxu0 %v768_v47  ;;  %v769_v48 = vld [vmem:[#allocation2 + $0x10] sm:$0xff] }
 0x334   : > { %872 = vst [vmem:[#allocation2 + $0x18] sm:$0xf] %v1327_v18  ;;  %826 = vmatpush.msrb.mxu1 %v769_v48 }
 0x336   : > { %v635_v50 = vpop.permute.xlu1 %634 }
 0x337   : > { %v639_v51 = vsel %vm638_vm11, %v635_v50, %v637_v49  ;;  %v640_v52 = vsel %vm638_vm11, %v637_v49, %v635_v50 }
 0x338   : > { %v647_v53 = vsel %vm645_vm12, %v640_v52, 0.0  ;;  %v648_v54 = vsel %vm644_vm10, %v639_v51, 0.0  ;;  %vm863_vm10 = vcmp.lt.s32.totalorder %v1426_v21, 120 }
 0x339   : > { %649 = vst [vmem:[#allocation2 + $0x30] sm:$0xf] %v647_v53 }
 0x33a   : > { %650 = vst [vmem:[#allocation2] sm:$0xf] %v648_v54 }
 0x340   : > { %v766_v56 = vld [vmem:[#allocation2 + $0x30] sm:$0xff] }
 0x341   : > { %807 = vmatpush.msrb.mxu0 %v766_v56  ;;  %847 = vst [vmem:[#allocation2 + $0x30] sm:$0xf] %v1327_v18  ;;  %v767_v57 = vld [vmem:[#allocation2] sm:$0xff] }
 0x342   : > { %857 = vst [vmem:[#allocation2 + $0x30] sm:$0xf0] %v1592_v19  ;;  %827 = vmatpush.msrb.mxu1 %v767_v57  ;;  %1103 = vmatmul.msk.f32.vlgmr.msrb.gmra.mxu0 %vm385_vm1, %v765_v55 }
 0x343   : > { %1105 = vmatmul.msk.f32.vlgmr.msrb.gmra.mxu1 %vm385_vm1, %v765_v55 }
 0x349   : > { %v922_v31 = vld [vmem:[#allocation2 + $0x30] sm:$0xff] }
 0x3bf   : > { %v809_v59 = vpop.f32.mrf.mxu0 }
 0x3c0   : > { %v810_v60 = vadd.f32 %v809_v59, %v781_v58  ;;  %v829_v61 = vpop.f32.mrf.mxu1 }
 0x3c1   : > { %v830_v62 = vadd.f32 %v829_v61, %v781_v58 }
 0x3c2   : > { %v854_v63 = vrot.slane %v810_v60, 4  ;;  %884 = vst [vmem:[#allocation2 + $0x48] sm:$0xf] %v810_v60  ;;  %832 = vrot.lane.b32.xlu0 %v810_v60, %s1328_s30  ;;  %859 = vrot.lane.b32.xlu1 %v810_v60, %s1329_s4 }
 0x3c3   : > { %885 = vst [vmem:[#allocation2 + $0x28] sm:$0xf] %v830_v62  ;;  %v908_v1 = vrot.slane %v830_v62, 4  ;;  %861 = vrot.lane.b32.xlu2 %v830_v62, %s1329_s4 }
 0x3c4   : > { %858 = vst [vmem:[#allocation2] sm:$0xf0] %v854_v63 }
 0x3c5   : > { %912 = vst [vmem:[#allocation2 + $0x8] sm:$0xf0] %v908_v1 }
 0x3ca   : > { %834 = vrot.lane.b32.xlu1 %v830_v62, %s1328_s30 }
 0x3cb   : > { %936 = vperm.xlu2 %1200, %v1106_v4  }
 0x41d   : > { %v862_v5 = vpop.permute.xlu2 %861 }
 0x425   : > { %v937_v34 = vpop.permute.xlu2 %936 }
 0x434   : > { %v860_v6 = vpop.permute.xlu1 %859  ;;  %v833_v14 = vpop.permute.xlu0 %832 }
 0x435   : > { %v864_v7 = vsel %vm863_vm10, %v860_v6, %v862_v5  ;;  %v865_v8 = vsel %vm863_vm10, %v862_v5, %v860_v6 }
 0x436   : > { %v871_v29 = vsel %vm867_vm14, %v864_v7, 0.0  ;;  %v886_v9 = vsel %vm866_vm13, %v864_v7, 0.0  ;;  %v887_v10 = vsel %vm867_vm14, %v865_v8, 0.0  ;;  %v916_v11 = vsel %vm866_vm13, %v865_v8, 0.0 }
 0x437   : > { %873 = vst [vmem:[#allocation2 + $0x10] sm:$0xf] %v871_v29  ;;  %v890_v12 = vrot.slane %v886_v9, 4  ;;  %v891_v13 = vrot.slane %v887_v10, 4 }
 0x438   : > { %918 = vst [vmem:[#allocation2 + $0x40] sm:$0xf] %v916_v11 }
 0x439   : > { %894 = vst [vmem:[#allocation2 + $0x48] sm:$0xf0] %v890_v12 }
 0x43a   : > { %895 = vst [vmem:[#allocation2 + $0x28] sm:$0xf0] %v891_v13 }
 0x43c   : > { %v835_v15 = vpop.permute.xlu1 %834 }
 0x43d   : > { %v837_v16 = vsel %vm836_vm15, %v833_v14, %v835_v15  ;;  %v838_v17 = vsel %vm836_vm15, %v835_v15, %v833_v14 }
 0x43e   : > { %v846_v18 = vsel %vm842_vm2, %v838_v17, 0.0  ;;  %v874_v19 = vsel %vm841_vm0, %v838_v17, 0.0  ;;  %v875_v20 = vsel %vm842_vm2, %v837_v16, 0.0  ;;  %v900_v22 = vsel %vm841_vm0, %v837_v16, 0.0 }
 0x43f   : > { %848 = vst [vmem:[#allocation2] sm:$0xf] %v846_v18  ;;  %v878_v23 = vrot.slane %v874_v19, 4  ;;  %v879_v24 = vrot.slane %v875_v20, 4  ;;  %v930_v25 = vld [vmem:[#allocation2 + $0x40] sm:$0xf] }
 0x440   : > { %902 = vst [vmem:[#allocation2 + $0x8] sm:$0xf] %v900_v22  ;;  %1107 = vmatpush.msk.msrb.mxu2 %vm389_vm3, %v930_v25  ;;  %v926_v33 = vld [vmem:[#allocation2 + $0x48] sm:$0xff] }
 0x441   : > { %882 = vst [vmem:[#allocation2 + $0x18] sm:$0xf0] %v878_v23  ;;  %v927_v21 = vld [vmem:[#allocation2 + $0x28] sm:$0xff] }
 0x442   : > { %883 = vst [vmem:[#allocation2 + $0x10] sm:$0xf0] %v879_v24  ;;  %981 = vmatpush.msrb.mxu3 %v927_v21 }
 0x446   : > { %v923_v30 = vld [vmem:[#allocation2] sm:$0xff] }
 0x447   : > { %v928_v32 = vld [vmem:[#allocation2 + $0x8] sm:$0xff] }
 0x448   : > { %960 = vmatpush.msrb.mxu2 %v928_v32  ;;  %v924_v28 = vld [vmem:[#allocation2 + $0x18] sm:$0xff] }
 0x449   : > { %v925_v26 = vld [vmem:[#allocation2 + $0x10] sm:$0xff] }
 0x44a   : > { %961 = vmatpush.msrb.mxu2 %v926_v33  ;;  %982 = vmatpush.msrb.mxu3 %v925_v26 }
 0x44c   : > { %962 = vmatpush.msrb.mxu2 %v924_v28  ;;  %983 = vmatpush.msrb.mxu3 %v923_v30 }
 0x44d   : > { %1110 = vmatmul.msk.f32.vlgmr.msrb.gmra.mxu3 %vm385_vm1, %v921_v27 }
 0x44e   : > { %963 = vmatpush.msrb.mxu2 %v922_v31 }
 0x44f   : > { %1108 = vmatmul.msk.f32.vlgmr.msrb.gmra.mxu2 %vm385_vm1, %v921_v27 }
 0x4d0   : > { %v985_v35 = vpop.f32.mrf.mxu3 }
 0x4d1   : > { %v986_v36 = vadd.f32 %v985_v35, %v937_v34 }
 0x4d2   : > { %v965_v37 = vpop.f32.mrf.mxu2 }
 0x4d3   : > { %v990_v38 = vrot.slane %v986_v36, 4  ;;  %v966_v39 = vadd.f32 %v965_v37, %v937_v34 }
 0x4d5   : > { %v991_v40 = vsel %vm389_vm3, %v966_v39, %v990_v38 }
 0x4d6   : > { %v993_v41 = vadd.f32 %v991_v40, %v1413_v0 }
 0x4d8   : > { %994 = vst [vmem:[%s180_s19] sm:$0xff] %v993_v41 }
 0x4d9   : > { %1258 = shalt.err (!%p1255_p8)
}
 0x4da   : > { %1122 = dma.vmem_to_hbm [thread:$0]  (%p1388_p5), %s1010_s20, 128, %s1012_s24, %s996_s16  }
 0x4db PF: > { %p1134_p9 = scmp.ge.s32.totalorder %s1297_s15, 2  ;;  %s1023_s5 = sand.u32 1, %s1285_s12  }
 0x4dc   : > { %s1024_s6 = scalar_lea.sflag [#allocation5], %s1023_s5 }
 0x4dd   : > { %p1129_p10 = pnand %p1134_p9, %p1392_p6 }
 0x4df   : > { %p1130_p11 = pneg %p1129_p10 }
 0x4e1   : > { %1280 = dma.done.wait (%p1130_p11), %s1024_s6, 128  }
 0x4e2   : > { %1282 = vsyncadd (%p1130_p11), %s1024_s6, 4294967168  ;;  %p14_p12 = scmp.ge.s32.totalorder %s1375_s18, 4   ;;  %s1682_s12 = smov %s1289_s13 }
 0x4e3   : > { %s1683_s13 = smov %s1293_s14  ;;  %s1684_s14 = smov %s1386_s21 }
 0x4e4   : > { %s1685_s15 = smov %s1375_s18  ;;  %16 = sbr.rel (!%p14_p12) target bundleno = 4 (0x4), region = 78 }
 0x4e9   :  { %1030 = vsyncpa [#allocation4], 1 }
 0x4ea   :  { %1032 = vsyncpa [#allocation4 + $0x1], 1 }
 0x4eb   :  { %1033 = vsyncpa [#allocation5], 1 }
 0x4ec   :  { %1035 = vsyncpa [#allocation5 + $0x1], 1 }

</bundles_post_ra>
